<compile_context>
chip_gen: v5e
topology: v5e:2x2
jax: 0.10.0
libtpu: 0.0.40
codegen_flags: <defaults>
</compile_context>

<pallas_src>
import functools

import jax
import jax.numpy as jnp
from jax import lax
from jax.experimental import pallas as pl
from jax.experimental.pallas import tpu as pltpu


# ----------------------------- Pallas kernel ------------------------------ #
def judge_kernel(x2d_ref, lens_ref, w_x_ref, w_rec_ref, bias_ref,
                 fc1_w_ref, fc1_b_ref, fc2_w_ref, fc2_b_ref,
                 out_ref, xproj_ref, *, L, B, H):
    lens = lens_ref[...]                                   # (B, 1) int32
    w_rec = w_rec_ref[...]                                 # (2H, 8H) bf16

    # Hoisted layer-0 input projection for all L+1 super-steps (off the serial path):
    # one ((L+1)*B, D) x (D, 8H) matmul.  w_x already scatters the result into the
    # layer-0 columns of the permuted 8H gate layout, and the per-super-step bias
    # schedule (b0 on layer-0 cols for s<L, b1 on layer-1 cols for s>=1) is folded in,
    # so the recurrent loop needs only ONE VPU add per step.
    proj = jnp.dot(x2d_ref[...], w_x_ref[...], preferred_element_type=jnp.float32)
    xproj_ref[...] = proj.reshape(L + 1, B, 8 * H) + bias_ref[...]

    H2 = 2 * H

    def step(s, carry):
        # Wavefront state at the start of super-step s:
        #   h_ab = [h1_{s-2} | h0_{s-1}],  c_ab = [c1_{s-2} | c0_{s-1}]
        h_ab, c_ab, h1_keep = carry
        # ONE fused matmul for both layers' gates (bf16 operands, f32 accumulate):
        #   layer-1 gates of step s-1 and layer-0 gates of step s, interleaved per
        #   gate type in 2H-wide blocks.
        g = jnp.dot(h_ab.astype(jnp.bfloat16), w_rec,
                    preferred_element_type=jnp.float32)    # (B, 8H)
        g = g + xproj_ref[s]                               # tile-aligned leading-axis read
        # Gate layout: [i|i, f|f, g|g, o|o], each block [layer1 0:H | layer0 H:2H]
        # -> the cell math below is lane-aligned for BOTH layers simultaneously.
        sig = jax.nn.sigmoid(g)                            # one full-width EUP pass
        i_ab = sig[:, 0 * H2:1 * H2]
        f_ab = sig[:, 1 * H2:2 * H2]
        o_ab = sig[:, 3 * H2:4 * H2]
        g_ab = jnp.tanh(g[:, 2 * H2:3 * H2])               # vreg-aligned 2H slice
        c_ab = f_ab * c_ab + i_ab * g_ab
        h_ab = o_ab * jnp.tanh(c_ab)
        # Packed-sequence semantics: layer-1 just produced step s-1; keep it only
        # while still valid.  Only h1 needs masking: validity (t < len) is monotone,
        # so stale h0/c0/c1 of finished sequences never feed a valid step, and only
        # h1_keep is consumed after the loop (invariant: lens <= L).
        valid = (s - 1) < lens                             # (B, 1) bool
        h1_keep = jnp.where(valid, h_ab[:, 0:H], h1_keep)
        return h_ab, c_ab, h1_keep

    z2 = jnp.zeros((B, H2), jnp.float32)
    _, _, h1 = lax.fori_loop(0, L + 1, step,
                             (z2, z2, jnp.zeros((B, H), jnp.float32)),
                             unroll=True)

    # fc head: ReLU -> Dropout(eval: identity) -> Linear -> ReLU -> Dropout -> Linear
    z = jnp.maximum(h1, 0.0)
    z = jnp.dot(z, fc1_w_ref[...], preferred_element_type=jnp.float32) + fc1_b_ref[...]
    z = jnp.maximum(z, 0.0)
    z = jnp.dot(z, fc2_w_ref[...], preferred_element_type=jnp.float32) + fc2_b_ref[...]
    out_ref[...] = z                                       # (B, 128) lane-dense store


# ------------------------------- wrapper ----------------------------------- #
def _full_spec(shape):
    zeros = (0,) * len(shape)
    return pl.BlockSpec(shape, lambda i, _z=zeros: _z)


def _pack_gates(w_a, w_b, H):
    """Interleave two (rows, 4H) [i|f|g|o] gate matrices into (rows, 8H) with layout
    [i_a i_b f_a f_b g_a g_b o_a o_b]; 'a' occupies the first H lanes of each block."""
    cols = []
    for k in range(4):
        cols += [w_a[:, k * H:(k + 1) * H], w_b[:, k * H:(k + 1) * H]]
    return jnp.concatenate(cols, axis=1)


_OUT_PAD = 128   # pad output lanes to a full vreg width -> unmasked vst
_SUBLANE = 8     # pad batch to a full sublane tile


def judge_forward(x, x_lens, params):
    """x: (B, L, D) float32 ; x_lens: (B,) int32."""
    B, L, D = x.shape
    H = params["w_hh0"].shape[0]
    out_dim = params["fc2_w"].shape[1]
    B_pad = max(_SUBLANE, ((B + _SUBLANE - 1) // _SUBLANE) * _SUBLANE)

    # Time-major, batch padded to 8 sublanes (tile-aligned per-step reads, better
    # sublane occupancy), plus ONE extra zero timestep for the final wavefront step.
    x_tm = jnp.transpose(x, (1, 0, 2)).astype(jnp.float32)            # (L, B, D)
    x_tm = jnp.pad(x_tm, ((0, 1), (0, B_pad - B), (0, 0)))            # (L+1, Bp, D)
    x2d = x_tm.reshape((L + 1) * B_pad, D)
    lens = jnp.pad(x_lens.astype(jnp.int32), (0, B_pad - B)).reshape(B_pad, 1)

    z4h = jnp.zeros((H, 4 * H), jnp.float32)
    z4d = jnp.zeros((D, 4 * H), jnp.float32)
    z4b = jnp.zeros((1, 4 * H), jnp.float32)

    # Wavefront-packed recurrent weight (2H, 8H), bf16 (matmul operand only):
    #   rows 0:H   multiply h1_{s-2}: W_hh1 -> layer-1 cols
    #   rows H:2H  multiply h0_{s-1}: W_ih1 -> layer-1 cols, W_hh0 -> layer-0 cols
    w_rec = jnp.concatenate(
        [_pack_gates(params["w_hh1"], z4h, H),
         _pack_gates(params["w_ih1"], params["w_hh0"], H)],
        axis=0).astype(jnp.bfloat16)                                   # (2H, 8H)

    # Layer-0 input-projection weight scattered into the 8H layout (layer-1 cols = 0).
    w_x = _pack_gates(z4d, params["w_ih0"], H)                         # (D, 8H)

    # Per-super-step bias schedule: b0 on layer-0 cols for s < L, b1 on layer-1 cols
    # for s >= 1.  At s = 0 the layer-1 columns are exactly zero, so the layer-1
    # "step -1" is an exact no-op on the zero state (no runtime mask needed).
    b1_slab = _pack_gates(params["b1"], z4b, H)                        # (1, 8H)
    b0_slab = _pack_gates(z4b, params["b0"], H)                        # (1, 8H)
    s_idx = jnp.arange(L + 1)
    bias_sched = ((s_idx >= 1).astype(jnp.float32)[:, None, None] * b1_slab[None]
                  + (s_idx < L).astype(jnp.float32)[:, None, None] * b0_slab[None])

    # Pad fc2 to 128 output lanes -> lane-dense (unmasked) output store in-kernel.
    fc2_w_pad = jnp.zeros((params["fc2_w"].shape[0], _OUT_PAD), jnp.float32)
    fc2_w_pad = fc2_w_pad.at[:, :out_dim].set(params["fc2_w"])
    fc2_b_pad = jnp.zeros((1, _OUT_PAD), jnp.float32)
    fc2_b_pad = fc2_b_pad.at[:, :out_dim].set(params["fc2_b"])

    args = [x2d, lens, w_x, w_rec, bias_sched,
            params["fc1_w"], params["fc1_b"], fc2_w_pad, fc2_b_pad]

    kernel = functools.partial(judge_kernel, L=L, B=B_pad, H=H)
    out = pl.pallas_call(
        kernel,
        out_shape=jax.ShapeDtypeStruct((B_pad, _OUT_PAD), jnp.float32),
        grid_spec=pltpu.PrefetchScalarGridSpec(
            num_scalar_prefetch=0,
            grid=(1,),
            in_specs=[_full_spec(a.shape) for a in args],
            out_specs=_full_spec((B_pad, _OUT_PAD)),
            scratch_shapes=[pltpu.VMEM((L + 1, B_pad, 8 * H), jnp.float32)]),
        compiler_params=pltpu.CompilerParams(
            dimension_semantics=("arbitrary",)),
    )(*args)
    return out[:B, :out_dim]


# --------------------------- parameter creation ----------------------------- #
def make_params(key, in_size, hidden, lin_out_1, lin_out_2):
    ks = jax.random.split(key, 10)
    lstm_scale = 1.0 / jnp.sqrt(hidden)

    def unif(k, shape, s):
        return jax.random.uniform(k, shape, jnp.float32, -s, s)

    def xavier(k, fan_in, fan_out):
        limit = jnp.sqrt(6.0 / (fan_in + fan_out))
        return jax.random.uniform(k, (fan_in, fan_out), jnp.float32, -limit, limit)

    params = {
        # layer 0 LSTM (transposed: (in, 4H) / (H, 4H)), combined bias (1, 4H)
        "w_ih0": unif(ks[0], (in_size, 4 * hidden), lstm_scale),
        "w_hh0": unif(ks[1], (hidden, 4 * hidden), lstm_scale),
        "b0":    unif(ks[2], (1, 4 * hidden), lstm_scale)
               + unif(ks[3], (1, 4 * hidden), lstm_scale),
        # layer 1 LSTM
        "w_ih1": unif(ks[4], (hidden, 4 * hidden), lstm_scale),
        "w_hh1": unif(ks[5], (hidden, 4 * hidden), lstm_scale),
        "b1":    unif(ks[6], (1, 4 * hidden), lstm_scale)
               + unif(ks[7], (1, 4 * hidden), lstm_scale),
        # fc linears (xavier_uniform weight, bias filled with 0.01, as in init_weights)
        "fc1_w": xavier(ks[8], hidden, lin_out_1),
        "fc1_b": jnp.full((1, lin_out_1), 0.01, jnp.float32),
        "fc2_w": xavier(ks[9], lin_out_1, lin_out_2),
        "fc2_b": jnp.full((1, lin_out_2), 0.01, jnp.float32),
    }
    return params


# --------------------------- pure-JAX reference ----------------------------- #
def judge_reference(x, x_lens, params):
    B, L, D = x.shape
    H = params["w_hh0"].shape[0]
    hp = functools.partial(jnp.dot, precision=lax.Precision.HIGHEST)

    def cell(xt, h, c, w_ih, w_hh, b):
        g = hp(xt, w_ih) + hp(h, w_hh) + b
        i = jax.nn.sigmoid(g[:, :H]); f = jax.nn.sigmoid(g[:, H:2 * H])
        gg = jnp.tanh(g[:, 2 * H:3 * H]); o = jax.nn.sigmoid(g[:, 3 * H:])
        c = f * c + i * gg
        return o * jnp.tanh(c), c

    h0 = c0 = h1 = c1 = jnp.zeros((B, H), jnp.float32)
    lens = x_lens.reshape(B, 1)
    for t in range(L):
        xt = x[:, t, :]
        h0n, c0n = cell(xt, h0, c0, params["w_ih0"], params["w_hh0"], params["b0"])
        h1n, c1n = cell(h0n, h1, c1, params["w_ih1"], params["w_hh1"], params["b1"])
        valid = t < lens
        h0 = jnp.where(valid, h0n, h0); c0 = jnp.where(valid, c0n, c0)
        h1 = jnp.where(valid, h1n, h1); c1 = jnp.where(valid, c1n, c1)

    z = jnp.maximum(h1, 0.0)
    z = hp(z, params["fc1_w"]) + params["fc1_b"]
    z = jnp.maximum(z, 0.0)
    z = hp(z, params["fc2_w"]) + params["fc2_b"]
    return z


# ---------------------------------- main ------------------------------------ #
if __name__ == "__main__":
    # Small shapes consistent with the module:
    #   rnn_in_size=32, rnn_out_size=32, lin_in_1=32, lin_out_1=32, lin_in_2=32, lin_out_2=8
    B, L, D_IN, HID, LIN1, LIN2 = 2, 8, 32, 32, 32, 8

    key = jax.random.PRNGKey(0)
    k_x, k_p = jax.random.split(key)

    x = jax.random.normal(k_x, (B, L, D_IN), jnp.float32)
    x_lens = jnp.array([8, 5], dtype=jnp.int32)
    # zero the padded tail (irrelevant because of masking, but mirrors padded input)
    time_idx = jnp.arange(L)[None, :, None]
    x = jnp.where(time_idx < x_lens[:, None, None], x, 0.0)

    params = make_params(k_p, D_IN, HID, LIN1, LIN2)

    out = judge_forward(x, x_lens, params)
    out = jax.block_until_ready(out)

    ref = judge_reference(x, x_lens, params)
    assert out.shape == (B, LIN2)
    # Slightly looser tolerance than the f32 version: the recurrent matmul now uses
    # bf16 MXU operands (per perf review) vs. the f32 Precision.HIGHEST reference.
    assert jnp.allclose(out, ref, atol=2e-2, rtol=2e-2), (
        f"max diff {jnp.max(jnp.abs(out - ref))}")

    print("KERNEL_OK")
</pallas_src>

<mosaic_0001>
module attributes {stable_mosaic.version = 11 : i64} {
  func.func @judge_kernel(%arg0: i32, %arg1: memref<72x32xf32, #tpu.memory_space<vmem>>, %arg2: memref<8x1xi32, #tpu.memory_space<vmem>>, %arg3: memref<32x256xf32, #tpu.memory_space<vmem>>, %arg4: memref<64x256xbf16, #tpu.memory_space<vmem>>, %arg5: memref<9x1x256xf32, #tpu.memory_space<vmem>>, %arg6: memref<32x32xf32, #tpu.memory_space<vmem>>, %arg7: memref<1x32xf32, #tpu.memory_space<vmem>>, %arg8: memref<32x128xf32, #tpu.memory_space<vmem>>, %arg9: memref<1x128xf32, #tpu.memory_space<vmem>>, %arg10: memref<8x128xf32, #tpu.memory_space<vmem>>, %arg11: memref<9x8x256xf32, #tpu.memory_space<vmem>>) attributes {dimension_semantics = [#tpu.dimension_semantics<arbitrary>], iteration_bounds = array<i64: 1>, scalar_prefetch = 0 : i64, scratch_operands = 1 : i64, tpu.core_type = #tpu.core_type<tc>, window_params = [{pipeline_mode = #tpu.pipeline_mode<synchronous>, transform_indices = @transform_0, window_bounds = array<i64: 72, 32>}, {pipeline_mode = #tpu.pipeline_mode<synchronous>, transform_indices = @transform_1, window_bounds = array<i64: 8, 1>}, {pipeline_mode = #tpu.pipeline_mode<synchronous>, transform_indices = @transform_2, window_bounds = array<i64: 32, 256>}, {pipeline_mode = #tpu.pipeline_mode<synchronous>, transform_indices = @transform_3, window_bounds = array<i64: 64, 256>}, {pipeline_mode = #tpu.pipeline_mode<synchronous>, transform_indices = @transform_4, window_bounds = array<i64: 9, 1, 256>}, {pipeline_mode = #tpu.pipeline_mode<synchronous>, transform_indices = @transform_5, window_bounds = array<i64: 32, 32>}, {pipeline_mode = #tpu.pipeline_mode<synchronous>, transform_indices = @transform_6, window_bounds = array<i64: 1, 32>}, {pipeline_mode = #tpu.pipeline_mode<synchronous>, transform_indices = @transform_7, window_bounds = array<i64: 32, 128>}, {pipeline_mode = #tpu.pipeline_mode<synchronous>, transform_indices = @transform_8, window_bounds = array<i64: 1, 128>}, {pipeline_mode = #tpu.pipeline_mode<synchronous>, transform_indices = @transform_9, window_bounds = array<i64: 8, 128>}]} {
    %c0 = arith.constant 0 : index
    %c0_0 = arith.constant 0 : index
    %0 = vector.load %arg2[%c0, %c0_0] : memref<8x1xi32, #tpu.memory_space<vmem>>, vector<8x1xi32>
    %c0_1 = arith.constant 0 : index
    %c0_2 = arith.constant 0 : index
    %1 = vector.load %arg4[%c0_1, %c0_2] : memref<64x256xbf16, #tpu.memory_space<vmem>>, vector<64x256xbf16>
    %c0_3 = arith.constant 0 : index
    %c0_4 = arith.constant 0 : index
    %2 = vector.load %arg1[%c0_3, %c0_4] : memref<72x32xf32, #tpu.memory_space<vmem>>, vector<72x32xf32>
    %c0_5 = arith.constant 0 : index
    %c0_6 = arith.constant 0 : index
    %3 = vector.load %arg3[%c0_5, %c0_6] : memref<32x256xf32, #tpu.memory_space<vmem>>, vector<32x256xf32>
    %cst = arith.constant dense<0.000000e+00> : vector<72x256xf32>
    %4 = tpu.matmul %2, %3, %cst {dimension_numbers = #tpu.dot_dimension_numbers<[1], [0], [0], [1], [0, 0, 1, 1], [], []>} : vector<72x32xf32>, vector<32x256xf32>, vector<72x256xf32> -> vector<72x256xf32>
    %5 = vector.shape_cast %4 : vector<72x256xf32> to vector<9x8x256xf32>
    %c0_7 = arith.constant 0 : index
    %c0_8 = arith.constant 0 : index
    %c0_9 = arith.constant 0 : index
    %6 = vector.load %arg5[%c0_7, %c0_8, %c0_9] : memref<9x1x256xf32, #tpu.memory_space<vmem>>, vector<9x1x256xf32>
    %7 = vector.broadcast %6 : vector<9x1x256xf32> to vector<9x8x256xf32>
    %8 = arith.addf %5, %7 : vector<9x8x256xf32>
    %c0_10 = arith.constant 0 : index
    %c0_11 = arith.constant 0 : index
    %c0_12 = arith.constant 0 : index
    %9 = vector.load %arg11[%c0_10, %c0_11, %c0_12] : memref<9x8x256xf32, #tpu.memory_space<vmem>>, vector<9x8x256xf32>
    tpu.vector_store %arg11[%c0_10, %c0_11, %c0_12], %8 {strides = array<i32>} : memref<9x8x256xf32, #tpu.memory_space<vmem>>, vector<9x8x256xf32>,
    %cst_13 = arith.constant 0.000000e+00 : f32
    %10 = vector.broadcast %cst_13 : f32 to vector<8x64xf32>
    %cst_14 = arith.constant 0.000000e+00 : f32
    %11 = vector.broadcast %cst_14 : f32 to vector<8x32xf32>
    %c0_i32 = arith.constant 0 : i32
    %12 = arith.truncf %10 : vector<8x64xf32> to vector<8x64xbf16>
    %cst_15 = arith.constant dense<0.000000e+00> : vector<8x256xf32>
    %13 = tpu.matmul %12, %1, %cst_15 {dimension_numbers = #tpu.dot_dimension_numbers<[1], [0], [0], [1], [0, 0, 1, 1], [], []>} : vector<8x64xbf16>, vector<64x256xbf16>, vector<8x256xf32> -> vector<8x256xf32>
    %14 = arith.index_cast %c0_i32 : i32 to index
    %c0_16 = arith.constant 0 : index
    %c0_17 = arith.constant 0 : index
    %15 = vector.load %arg11[%14, %c0_16, %c0_17] : memref<9x8x256xf32, #tpu.memory_space<vmem>>, vector<1x8x256xf32>
    %16 = vector.shape_cast %15 : vector<1x8x256xf32> to vector<8x256xf32>
    %17 = arith.addf %13, %16 : vector<8x256xf32>
    %18 = arith.negf %17 : vector<8x256xf32>
    %19 = math.exp %18 : vector<8x256xf32>
    %cst_18 = arith.constant 1.000000e+00 : f32
    %20 = vector.broadcast %cst_18 : f32 to vector<8x256xf32>
    %21 = arith.addf %20, %19 : vector<8x256xf32>
    %22 = arith.divf %20, %21 : vector<8x256xf32>
    %23 = vector.extract_strided_slice %22 {offsets = [0, 0], sizes = [8, 64], strides = [1, 1]} : vector<8x256xf32> to vector<8x64xf32>
    %24 = vector.extract_strided_slice %22 {offsets = [0, 64], sizes = [8, 64], strides = [1, 1]} : vector<8x256xf32> to vector<8x64xf32>
    %25 = vector.extract_strided_slice %22 {offsets = [0, 192], sizes = [8, 64], strides = [1, 1]} : vector<8x256xf32> to vector<8x64xf32>
    %26 = vector.extract_strided_slice %17 {offsets = [0, 128], sizes = [8, 64], strides = [1, 1]} : vector<8x256xf32> to vector<8x64xf32>
    %27 = math.tanh %26 : vector<8x64xf32>
    %28 = arith.mulf %24, %10 : vector<8x64xf32>
    %29 = arith.mulf %23, %27 : vector<8x64xf32>
    %30 = arith.addf %28, %29 : vector<8x64xf32>
    %31 = math.tanh %30 : vector<8x64xf32>
    %32 = arith.mulf %25, %31 : vector<8x64xf32>
    %c1_i32 = arith.constant 1 : i32
    %33 = arith.subi %c0_i32, %c1_i32 : i32
    %34 = vector.broadcast %33 : i32 to vector<8x1xi32>
    %35 = arith.cmpi slt, %34, %0 : vector<8x1xi32>
    %36 = vector.extract_strided_slice %32 {offsets = [0, 0], sizes = [8, 32], strides = [1, 1]} : vector<8x64xf32> to vector<8x32xf32>
    %37 = vector.shape_cast %35 : vector<8x1xi1> to vector<8x1xi1>
    %38 = vector.broadcast %37 : vector<8x1xi1> to vector<8x32xi1>
    %39 = arith.select %38, %36, %11 : vector<8x32xi1>, vector<8x32xf32>
    %c1_i32_19 = arith.constant 1 : i32
    %40 = arith.truncf %32 : vector<8x64xf32> to vector<8x64xbf16>
    %cst_20 = arith.constant dense<0.000000e+00> : vector<8x256xf32>
    %41 = tpu.matmul %40, %1, %cst_20 {dimension_numbers = #tpu.dot_dimension_numbers<[1], [0], [0], [1], [0, 0, 1, 1], [], []>} : vector<8x64xbf16>, vector<64x256xbf16>, vector<8x256xf32> -> vector<8x256xf32>
    %42 = arith.index_cast %c1_i32_19 : i32 to index
    %c0_21 = arith.constant 0 : index
    %c0_22 = arith.constant 0 : index
    %43 = vector.load %arg11[%42, %c0_21, %c0_22] : memref<9x8x256xf32, #tpu.memory_space<vmem>>, vector<1x8x256xf32>
    %44 = vector.shape_cast %43 : vector<1x8x256xf32> to vector<8x256xf32>
    %45 = arith.addf %41, %44 : vector<8x256xf32>
    %46 = arith.negf %45 : vector<8x256xf32>
    %47 = math.exp %46 : vector<8x256xf32>
    %cst_23 = arith.constant 1.000000e+00 : f32
    %48 = vector.broadcast %cst_23 : f32 to vector<8x256xf32>
    %49 = arith.addf %48, %47 : vector<8x256xf32>
    %50 = arith.divf %48, %49 : vector<8x256xf32>
    %51 = vector.extract_strided_slice %50 {offsets = [0, 0], sizes = [8, 64], strides = [1, 1]} : vector<8x256xf32> to vector<8x64xf32>
    %52 = vector.extract_strided_slice %50 {offsets = [0, 64], sizes = [8, 64], strides = [1, 1]} : vector<8x256xf32> to vector<8x64xf32>
    %53 = vector.extract_strided_slice %50 {offsets = [0, 192], sizes = [8, 64], strides = [1, 1]} : vector<8x256xf32> to vector<8x64xf32>
    %54 = vector.extract_strided_slice %45 {offsets = [0, 128], sizes = [8, 64], strides = [1, 1]} : vector<8x256xf32> to vector<8x64xf32>
    %55 = math.tanh %54 : vector<8x64xf32>
    %56 = arith.mulf %52, %30 : vector<8x64xf32>
    %57 = arith.mulf %51, %55 : vector<8x64xf32>
    %58 = arith.addf %56, %57 : vector<8x64xf32>
    %59 = math.tanh %58 : vector<8x64xf32>
    %60 = arith.mulf %53, %59 : vector<8x64xf32>
    %c1_i32_24 = arith.constant 1 : i32
    %61 = arith.subi %c1_i32_19, %c1_i32_24 : i32
    %62 = vector.broadcast %61 : i32 to vector<8x1xi32>
    %63 = arith.cmpi slt, %62, %0 : vector<8x1xi32>
    %64 = vector.extract_strided_slice %60 {offsets = [0, 0], sizes = [8, 32], strides = [1, 1]} : vector<8x64xf32> to vector<8x32xf32>
    %65 = vector.shape_cast %63 : vector<8x1xi1> to vector<8x1xi1>
    %66 = vector.broadcast %65 : vector<8x1xi1> to vector<8x32xi1>
    %67 = arith.select %66, %64, %39 : vector<8x32xi1>, vector<8x32xf32>
    %c2_i32 = arith.constant 2 : i32
    %68 = arith.truncf %60 : vector<8x64xf32> to vector<8x64xbf16>
    %cst_25 = arith.constant dense<0.000000e+00> : vector<8x256xf32>
    %69 = tpu.matmul %68, %1, %cst_25 {dimension_numbers = #tpu.dot_dimension_numbers<[1], [0], [0], [1], [0, 0, 1, 1], [], []>} : vector<8x64xbf16>, vector<64x256xbf16>, vector<8x256xf32> -> vector<8x256xf32>
    %70 = arith.index_cast %c2_i32 : i32 to index
    %c0_26 = arith.constant 0 : index
    %c0_27 = arith.constant 0 : index
    %71 = vector.load %arg11[%70, %c0_26, %c0_27] : memref<9x8x256xf32, #tpu.memory_space<vmem>>, vector<1x8x256xf32>
    %72 = vector.shape_cast %71 : vector<1x8x256xf32> to vector<8x256xf32>
    %73 = arith.addf %69, %72 : vector<8x256xf32>
    %74 = arith.negf %73 : vector<8x256xf32>
    %75 = math.exp %74 : vector<8x256xf32>
    %cst_28 = arith.constant 1.000000e+00 : f32
    %76 = vector.broadcast %cst_28 : f32 to vector<8x256xf32>
    %77 = arith.addf %76, %75 : vector<8x256xf32>
    %78 = arith.divf %76, %77 : vector<8x256xf32>
    %79 = vector.extract_strided_slice %78 {offsets = [0, 0], sizes = [8, 64], strides = [1, 1]} : vector<8x256xf32> to vector<8x64xf32>
    %80 = vector.extract_strided_slice %78 {offsets = [0, 64], sizes = [8, 64], strides = [1, 1]} : vector<8x256xf32> to vector<8x64xf32>
    %81 = vector.extract_strided_slice %78 {offsets = [0, 192], sizes = [8, 64], strides = [1, 1]} : vector<8x256xf32> to vector<8x64xf32>
    %82 = vector.extract_strided_slice %73 {offsets = [0, 128], sizes = [8, 64], strides = [1, 1]} : vector<8x256xf32> to vector<8x64xf32>
    %83 = math.tanh %82 : vector<8x64xf32>
    %84 = arith.mulf %80, %58 : vector<8x64xf32>
    %85 = arith.mulf %79, %83 : vector<8x64xf32>
    %86 = arith.addf %84, %85 : vector<8x64xf32>
    %87 = math.tanh %86 : vector<8x64xf32>
    %88 = arith.mulf %81, %87 : vector<8x64xf32>
    %c1_i32_29 = arith.constant 1 : i32
    %89 = arith.subi %c2_i32, %c1_i32_29 : i32
    %90 = vector.broadcast %89 : i32 to vector<8x1xi32>
    %91 = arith.cmpi slt, %90, %0 : vector<8x1xi32>
    %92 = vector.extract_strided_slice %88 {offsets = [0, 0], sizes = [8, 32], strides = [1, 1]} : vector<8x64xf32> to vector<8x32xf32>
    %93 = vector.shape_cast %91 : vector<8x1xi1> to vector<8x1xi1>
    %94 = vector.broadcast %93 : vector<8x1xi1> to vector<8x32xi1>
    %95 = arith.select %94, %92, %67 : vector<8x32xi1>, vector<8x32xf32>
    %c3_i32 = arith.constant 3 : i32
    %96 = arith.truncf %88 : vector<8x64xf32> to vector<8x64xbf16>
    %cst_30 = arith.constant dense<0.000000e+00> : vector<8x256xf32>
    %97 = tpu.matmul %96, %1, %cst_30 {dimension_numbers = #tpu.dot_dimension_numbers<[1], [0], [0], [1], [0, 0, 1, 1], [], []>} : vector<8x64xbf16>, vector<64x256xbf16>, vector<8x256xf32> -> vector<8x256xf32>
    %98 = arith.index_cast %c3_i32 : i32 to index
    %c0_31 = arith.constant 0 : index
    %c0_32 = arith.constant 0 : index
    %99 = vector.load %arg11[%98, %c0_31, %c0_32] : memref<9x8x256xf32, #tpu.memory_space<vmem>>, vector<1x8x256xf32>
    %100 = vector.shape_cast %99 : vector<1x8x256xf32> to vector<8x256xf32>
    %101 = arith.addf %97, %100 : vector<8x256xf32>
    %102 = arith.negf %101 : vector<8x256xf32>
    %103 = math.exp %102 : vector<8x256xf32>
    %cst_33 = arith.constant 1.000000e+00 : f32
    %104 = vector.broadcast %cst_33 : f32 to vector<8x256xf32>
    %105 = arith.addf %104, %103 : vector<8x256xf32>
    %106 = arith.divf %104, %105 : vector<8x256xf32>
    %107 = vector.extract_strided_slice %106 {offsets = [0, 0], sizes = [8, 64], strides = [1, 1]} : vector<8x256xf32> to vector<8x64xf32>
    %108 = vector.extract_strided_slice %106 {offsets = [0, 64], sizes = [8, 64], strides = [1, 1]} : vector<8x256xf32> to vector<8x64xf32>
    %109 = vector.extract_strided_slice %106 {offsets = [0, 192], sizes = [8, 64], strides = [1, 1]} : vector<8x256xf32> to vector<8x64xf32>
    %110 = vector.extract_strided_slice %101 {offsets = [0, 128], sizes = [8, 64], strides = [1, 1]} : vector<8x256xf32> to vector<8x64xf32>
    %111 = math.tanh %110 : vector<8x64xf32>
    %112 = arith.mulf %108, %86 : vector<8x64xf32>
    %113 = arith.mulf %107, %111 : vector<8x64xf32>
    %114 = arith.addf %112, %113 : vector<8x64xf32>
    %115 = math.tanh %114 : vector<8x64xf32>
    %116 = arith.mulf %109, %115 : vector<8x64xf32>
    %c1_i32_34 = arith.constant 1 : i32
    %117 = arith.subi %c3_i32, %c1_i32_34 : i32
    %118 = vector.broadcast %117 : i32 to vector<8x1xi32>
    %119 = arith.cmpi slt, %118, %0 : vector<8x1xi32>
    %120 = vector.extract_strided_slice %116 {offsets = [0, 0], sizes = [8, 32], strides = [1, 1]} : vector<8x64xf32> to vector<8x32xf32>
    %121 = vector.shape_cast %119 : vector<8x1xi1> to vector<8x1xi1>
    %122 = vector.broadcast %121 : vector<8x1xi1> to vector<8x32xi1>
    %123 = arith.select %122, %120, %95 : vector<8x32xi1>, vector<8x32xf32>
    %c4_i32 = arith.constant 4 : i32
    %124 = arith.truncf %116 : vector<8x64xf32> to vector<8x64xbf16>
    %cst_35 = arith.constant dense<0.000000e+00> : vector<8x256xf32>
    %125 = tpu.matmul %124, %1, %cst_35 {dimension_numbers = #tpu.dot_dimension_numbers<[1], [0], [0], [1], [0, 0, 1, 1], [], []>} : vector<8x64xbf16>, vector<64x256xbf16>, vector<8x256xf32> -> vector<8x256xf32>
    %126 = arith.index_cast %c4_i32 : i32 to index
    %c0_36 = arith.constant 0 : index
    %c0_37 = arith.constant 0 : index
    %127 = vector.load %arg11[%126, %c0_36, %c0_37] : memref<9x8x256xf32, #tpu.memory_space<vmem>>, vector<1x8x256xf32>
    %128 = vector.shape_cast %127 : vector<1x8x256xf32> to vector<8x256xf32>
    %129 = arith.addf %125, %128 : vector<8x256xf32>
    %130 = arith.negf %129 : vector<8x256xf32>
    %131 = math.exp %130 : vector<8x256xf32>
    %cst_38 = arith.constant 1.000000e+00 : f32
    %132 = vector.broadcast %cst_38 : f32 to vector<8x256xf32>
    %133 = arith.addf %132, %131 : vector<8x256xf32>
    %134 = arith.divf %132, %133 : vector<8x256xf32>
    %135 = vector.extract_strided_slice %134 {offsets = [0, 0], sizes = [8, 64], strides = [1, 1]} : vector<8x256xf32> to vector<8x64xf32>
    %136 = vector.extract_strided_slice %134 {offsets = [0, 64], sizes = [8, 64], strides = [1, 1]} : vector<8x256xf32> to vector<8x64xf32>
    %137 = vector.extract_strided_slice %134 {offsets = [0, 192], sizes = [8, 64], strides = [1, 1]} : vector<8x256xf32> to vector<8x64xf32>
    %138 = vector.extract_strided_slice %129 {offsets = [0, 128], sizes = [8, 64], strides = [1, 1]} : vector<8x256xf32> to vector<8x64xf32>
    %139 = math.tanh %138 : vector<8x64xf32>
    %140 = arith.mulf %136, %114 : vector<8x64xf32>
    %141 = arith.mulf %135, %139 : vector<8x64xf32>
    %142 = arith.addf %140, %141 : vector<8x64xf32>
    %143 = math.tanh %142 : vector<8x64xf32>
    %144 = arith.mulf %137, %143 : vector<8x64xf32>
    %c1_i32_39 = arith.constant 1 : i32
    %145 = arith.subi %c4_i32, %c1_i32_39 : i32
    %146 = vector.broadcast %145 : i32 to vector<8x1xi32>
    %147 = arith.cmpi slt, %146, %0 : vector<8x1xi32>
    %148 = vector.extract_strided_slice %144 {offsets = [0, 0], sizes = [8, 32], strides = [1, 1]} : vector<8x64xf32> to vector<8x32xf32>
    %149 = vector.shape_cast %147 : vector<8x1xi1> to vector<8x1xi1>
    %150 = vector.broadcast %149 : vector<8x1xi1> to vector<8x32xi1>
    %151 = arith.select %150, %148, %123 : vector<8x32xi1>, vector<8x32xf32>
    %c5_i32 = arith.constant 5 : i32
    %152 = arith.truncf %144 : vector<8x64xf32> to vector<8x64xbf16>
    %cst_40 = arith.constant dense<0.000000e+00> : vector<8x256xf32>
    %153 = tpu.matmul %152, %1, %cst_40 {dimension_numbers = #tpu.dot_dimension_numbers<[1], [0], [0], [1], [0, 0, 1, 1], [], []>} : vector<8x64xbf16>, vector<64x256xbf16>, vector<8x256xf32> -> vector<8x256xf32>
    %154 = arith.index_cast %c5_i32 : i32 to index
    %c0_41 = arith.constant 0 : index
    %c0_42 = arith.constant 0 : index
    %155 = vector.load %arg11[%154, %c0_41, %c0_42] : memref<9x8x256xf32, #tpu.memory_space<vmem>>, vector<1x8x256xf32>
    %156 = vector.shape_cast %155 : vector<1x8x256xf32> to vector<8x256xf32>
    %157 = arith.addf %153, %156 : vector<8x256xf32>
    %158 = arith.negf %157 : vector<8x256xf32>
    %159 = math.exp %158 : vector<8x256xf32>
    %cst_43 = arith.constant 1.000000e+00 : f32
    %160 = vector.broadcast %cst_43 : f32 to vector<8x256xf32>
    %161 = arith.addf %160, %159 : vector<8x256xf32>
    %162 = arith.divf %160, %161 : vector<8x256xf32>
    %163 = vector.extract_strided_slice %162 {offsets = [0, 0], sizes = [8, 64], strides = [1, 1]} : vector<8x256xf32> to vector<8x64xf32>
    %164 = vector.extract_strided_slice %162 {offsets = [0, 64], sizes = [8, 64], strides = [1, 1]} : vector<8x256xf32> to vector<8x64xf32>
    %165 = vector.extract_strided_slice %162 {offsets = [0, 192], sizes = [8, 64], strides = [1, 1]} : vector<8x256xf32> to vector<8x64xf32>
    %166 = vector.extract_strided_slice %157 {offsets = [0, 128], sizes = [8, 64], strides = [1, 1]} : vector<8x256xf32> to vector<8x64xf32>
    %167 = math.tanh %166 : vector<8x64xf32>
    %168 = arith.mulf %164, %142 : vector<8x64xf32>
    %169 = arith.mulf %163, %167 : vector<8x64xf32>
    %170 = arith.addf %168, %169 : vector<8x64xf32>
    %171 = math.tanh %170 : vector<8x64xf32>
    %172 = arith.mulf %165, %171 : vector<8x64xf32>
    %c1_i32_44 = arith.constant 1 : i32
    %173 = arith.subi %c5_i32, %c1_i32_44 : i32
    %174 = vector.broadcast %173 : i32 to vector<8x1xi32>
    %175 = arith.cmpi slt, %174, %0 : vector<8x1xi32>
    %176 = vector.extract_strided_slice %172 {offsets = [0, 0], sizes = [8, 32], strides = [1, 1]} : vector<8x64xf32> to vector<8x32xf32>
    %177 = vector.shape_cast %175 : vector<8x1xi1> to vector<8x1xi1>
    %178 = vector.broadcast %177 : vector<8x1xi1> to vector<8x32xi1>
    %179 = arith.select %178, %176, %151 : vector<8x32xi1>, vector<8x32xf32>
    %c6_i32 = arith.constant 6 : i32
    %180 = arith.truncf %172 : vector<8x64xf32> to vector<8x64xbf16>
    %cst_45 = arith.constant dense<0.000000e+00> : vector<8x256xf32>
    %181 = tpu.matmul %180, %1, %cst_45 {dimension_numbers = #tpu.dot_dimension_numbers<[1], [0], [0], [1], [0, 0, 1, 1], [], []>} : vector<8x64xbf16>, vector<64x256xbf16>, vector<8x256xf32> -> vector<8x256xf32>
    %182 = arith.index_cast %c6_i32 : i32 to index
    %c0_46 = arith.constant 0 : index
    %c0_47 = arith.constant 0 : index
    %183 = vector.load %arg11[%182, %c0_46, %c0_47] : memref<9x8x256xf32, #tpu.memory_space<vmem>>, vector<1x8x256xf32>
    %184 = vector.shape_cast %183 : vector<1x8x256xf32> to vector<8x256xf32>
    %185 = arith.addf %181, %184 : vector<8x256xf32>
    %186 = arith.negf %185 : vector<8x256xf32>
    %187 = math.exp %186 : vector<8x256xf32>
    %cst_48 = arith.constant 1.000000e+00 : f32
    %188 = vector.broadcast %cst_48 : f32 to vector<8x256xf32>
    %189 = arith.addf %188, %187 : vector<8x256xf32>
    %190 = arith.divf %188, %189 : vector<8x256xf32>
    %191 = vector.extract_strided_slice %190 {offsets = [0, 0], sizes = [8, 64], strides = [1, 1]} : vector<8x256xf32> to vector<8x64xf32>
    %192 = vector.extract_strided_slice %190 {offsets = [0, 64], sizes = [8, 64], strides = [1, 1]} : vector<8x256xf32> to vector<8x64xf32>
    %193 = vector.extract_strided_slice %190 {offsets = [0, 192], sizes = [8, 64], strides = [1, 1]} : vector<8x256xf32> to vector<8x64xf32>
    %194 = vector.extract_strided_slice %185 {offsets = [0, 128], sizes = [8, 64], strides = [1, 1]} : vector<8x256xf32> to vector<8x64xf32>
    %195 = math.tanh %194 : vector<8x64xf32>
    %196 = arith.mulf %192, %170 : vector<8x64xf32>
    %197 = arith.mulf %191, %195 : vector<8x64xf32>
    %198 = arith.addf %196, %197 : vector<8x64xf32>
    %199 = math.tanh %198 : vector<8x64xf32>
    %200 = arith.mulf %193, %199 : vector<8x64xf32>
    %c1_i32_49 = arith.constant 1 : i32
    %201 = arith.subi %c6_i32, %c1_i32_49 : i32
    %202 = vector.broadcast %201 : i32 to vector<8x1xi32>
    %203 = arith.cmpi slt, %202, %0 : vector<8x1xi32>
    %204 = vector.extract_strided_slice %200 {offsets = [0, 0], sizes = [8, 32], strides = [1, 1]} : vector<8x64xf32> to vector<8x32xf32>
    %205 = vector.shape_cast %203 : vector<8x1xi1> to vector<8x1xi1>
    %206 = vector.broadcast %205 : vector<8x1xi1> to vector<8x32xi1>
    %207 = arith.select %206, %204, %179 : vector<8x32xi1>, vector<8x32xf32>
    %c7_i32 = arith.constant 7 : i32
    %208 = arith.truncf %200 : vector<8x64xf32> to vector<8x64xbf16>
    %cst_50 = arith.constant dense<0.000000e+00> : vector<8x256xf32>
    %209 = tpu.matmul %208, %1, %cst_50 {dimension_numbers = #tpu.dot_dimension_numbers<[1], [0], [0], [1], [0, 0, 1, 1], [], []>} : vector<8x64xbf16>, vector<64x256xbf16>, vector<8x256xf32> -> vector<8x256xf32>
    %210 = arith.index_cast %c7_i32 : i32 to index
    %c0_51 = arith.constant 0 : index
    %c0_52 = arith.constant 0 : index
    %211 = vector.load %arg11[%210, %c0_51, %c0_52] : memref<9x8x256xf32, #tpu.memory_space<vmem>>, vector<1x8x256xf32>
    %212 = vector.shape_cast %211 : vector<1x8x256xf32> to vector<8x256xf32>
    %213 = arith.addf %209, %212 : vector<8x256xf32>
    %214 = arith.negf %213 : vector<8x256xf32>
    %215 = math.exp %214 : vector<8x256xf32>
    %cst_53 = arith.constant 1.000000e+00 : f32
    %216 = vector.broadcast %cst_53 : f32 to vector<8x256xf32>
    %217 = arith.addf %216, %215 : vector<8x256xf32>
    %218 = arith.divf %216, %217 : vector<8x256xf32>
    %219 = vector.extract_strided_slice %218 {offsets = [0, 0], sizes = [8, 64], strides = [1, 1]} : vector<8x256xf32> to vector<8x64xf32>
    %220 = vector.extract_strided_slice %218 {offsets = [0, 64], sizes = [8, 64], strides = [1, 1]} : vector<8x256xf32> to vector<8x64xf32>
    %221 = vector.extract_strided_slice %218 {offsets = [0, 192], sizes = [8, 64], strides = [1, 1]} : vector<8x256xf32> to vector<8x64xf32>
    %222 = vector.extract_strided_slice %213 {offsets = [0, 128], sizes = [8, 64], strides = [1, 1]} : vector<8x256xf32> to vector<8x64xf32>
    %223 = math.tanh %222 : vector<8x64xf32>
    %224 = arith.mulf %220, %198 : vector<8x64xf32>
    %225 = arith.mulf %219, %223 : vector<8x64xf32>
    %226 = arith.addf %224, %225 : vector<8x64xf32>
    %227 = math.tanh %226 : vector<8x64xf32>
    %228 = arith.mulf %221, %227 : vector<8x64xf32>
    %c1_i32_54 = arith.constant 1 : i32
    %229 = arith.subi %c7_i32, %c1_i32_54 : i32
    %230 = vector.broadcast %229 : i32 to vector<8x1xi32>
    %231 = arith.cmpi slt, %230, %0 : vector<8x1xi32>
    %232 = vector.extract_strided_slice %228 {offsets = [0, 0], sizes = [8, 32], strides = [1, 1]} : vector<8x64xf32> to vector<8x32xf32>
    %233 = vector.shape_cast %231 : vector<8x1xi1> to vector<8x1xi1>
    %234 = vector.broadcast %233 : vector<8x1xi1> to vector<8x32xi1>
    %235 = arith.select %234, %232, %207 : vector<8x32xi1>, vector<8x32xf32>
    %c8_i32 = arith.constant 8 : i32
    %236 = arith.truncf %228 : vector<8x64xf32> to vector<8x64xbf16>
    %cst_55 = arith.constant dense<0.000000e+00> : vector<8x256xf32>
    %237 = tpu.matmul %236, %1, %cst_55 {dimension_numbers = #tpu.dot_dimension_numbers<[1], [0], [0], [1], [0, 0, 1, 1], [], []>} : vector<8x64xbf16>, vector<64x256xbf16>, vector<8x256xf32> -> vector<8x256xf32>
    %238 = arith.index_cast %c8_i32 : i32 to index
    %c0_56 = arith.constant 0 : index
    %c0_57 = arith.constant 0 : index
    %239 = vector.load %arg11[%238, %c0_56, %c0_57] : memref<9x8x256xf32, #tpu.memory_space<vmem>>, vector<1x8x256xf32>
    %240 = vector.shape_cast %239 : vector<1x8x256xf32> to vector<8x256xf32>
    %241 = arith.addf %237, %240 : vector<8x256xf32>
    %242 = arith.negf %241 : vector<8x256xf32>
    %243 = math.exp %242 : vector<8x256xf32>
    %cst_58 = arith.constant 1.000000e+00 : f32
    %244 = vector.broadcast %cst_58 : f32 to vector<8x256xf32>
    %245 = arith.addf %244, %243 : vector<8x256xf32>
    %246 = arith.divf %244, %245 : vector<8x256xf32>
    %247 = vector.extract_strided_slice %246 {offsets = [0, 0], sizes = [8, 64], strides = [1, 1]} : vector<8x256xf32> to vector<8x64xf32>
    %248 = vector.extract_strided_slice %246 {offsets = [0, 64], sizes = [8, 64], strides = [1, 1]} : vector<8x256xf32> to vector<8x64xf32>
    %249 = vector.extract_strided_slice %246 {offsets = [0, 192], sizes = [8, 64], strides = [1, 1]} : vector<8x256xf32> to vector<8x64xf32>
    %250 = vector.extract_strided_slice %241 {offsets = [0, 128], sizes = [8, 64], strides = [1, 1]} : vector<8x256xf32> to vector<8x64xf32>
    %251 = math.tanh %250 : vector<8x64xf32>
    %252 = arith.mulf %248, %226 : vector<8x64xf32>
    %253 = arith.mulf %247, %251 : vector<8x64xf32>
    %254 = arith.addf %252, %253 : vector<8x64xf32>
    %255 = math.tanh %254 : vector<8x64xf32>
    %256 = arith.mulf %249, %255 : vector<8x64xf32>
    %c1_i32_59 = arith.constant 1 : i32
    %257 = arith.subi %c8_i32, %c1_i32_59 : i32
    %258 = vector.broadcast %257 : i32 to vector<8x1xi32>
    %259 = arith.cmpi slt, %258, %0 : vector<8x1xi32>
    %260 = vector.extract_strided_slice %256 {offsets = [0, 0], sizes = [8, 32], strides = [1, 1]} : vector<8x64xf32> to vector<8x32xf32>
    %261 = vector.shape_cast %259 : vector<8x1xi1> to vector<8x1xi1>
    %262 = vector.broadcast %261 : vector<8x1xi1> to vector<8x32xi1>
    %263 = arith.select %262, %260, %235 : vector<8x32xi1>, vector<8x32xf32>
    %c9_i32 = arith.constant 9 : i32
    %cst_60 = arith.constant 0.000000e+00 : f32
    %264 = vector.broadcast %cst_60 : f32 to vector<8x32xf32>
    %265 = arith.maximumf %263, %264 : vector<8x32xf32>
    %c0_61 = arith.constant 0 : index
    %c0_62 = arith.constant 0 : index
    %266 = vector.load %arg6[%c0_61, %c0_62] : memref<32x32xf32, #tpu.memory_space<vmem>>, vector<32x32xf32>
    %cst_63 = arith.constant dense<0.000000e+00> : vector<8x32xf32>
    %267 = tpu.matmul %265, %266, %cst_63 {dimension_numbers = #tpu.dot_dimension_numbers<[1], [0], [0], [1], [0, 0, 1, 1], [], []>} : vector<8x32xf32>, vector<32x32xf32>, vector<8x32xf32> -> vector<8x32xf32>
    %c0_64 = arith.constant 0 : index
    %c0_65 = arith.constant 0 : index
    %268 = vector.load %arg7[%c0_64, %c0_65] : memref<1x32xf32, #tpu.memory_space<vmem>>, vector<1x32xf32>
    %269 = vector.broadcast %268 : vector<1x32xf32> to vector<8x32xf32>
    %270 = arith.addf %267, %269 : vector<8x32xf32>
    %cst_66 = arith.constant 0.000000e+00 : f32
    %271 = vector.broadcast %cst_66 : f32 to vector<8x32xf32>
    %272 = arith.maximumf %270, %271 : vector<8x32xf32>
    %c0_67 = arith.constant 0 : index
    %c0_68 = arith.constant 0 : index
    %273 = vector.load %arg8[%c0_67, %c0_68] : memref<32x128xf32, #tpu.memory_space<vmem>>, vector<32x128xf32>
    %cst_69 = arith.constant dense<0.000000e+00> : vector<8x128xf32>
    %274 = tpu.matmul %272, %273, %cst_69 {dimension_numbers = #tpu.dot_dimension_numbers<[1], [0], [0], [1], [0, 0, 1, 1], [], []>} : vector<8x32xf32>, vector<32x128xf32>, vector<8x128xf32> -> vector<8x128xf32>
    %c0_70 = arith.constant 0 : index
    %c0_71 = arith.constant 0 : index
    %275 = vector.load %arg9[%c0_70, %c0_71] : memref<1x128xf32, #tpu.memory_space<vmem>>, vector<1x128xf32>
    %276 = vector.broadcast %275 : vector<1x128xf32> to vector<8x128xf32>
    %277 = arith.addf %274, %276 : vector<8x128xf32>
    %c0_72 = arith.constant 0 : index
    %c0_73 = arith.constant 0 : index
    %278 = vector.load %arg10[%c0_72, %c0_73] : memref<8x128xf32, #tpu.memory_space<vmem>>, vector<8x128xf32>
    tpu.vector_store %arg10[%c0_72, %c0_73], %277 {strides = array<i32>} : memref<8x128xf32, #tpu.memory_space<vmem>>, vector<8x128xf32>,
    return
  }
  func.func @transform_0(%arg0: i32) -> (i32, i32) {
    %c0_i32 = arith.constant 0 : i32
    %c0_i32_0 = arith.constant 0 : i32
    %c0_i32_1 = arith.constant 0 : i32
    return %c0_i32, %c0_i32_0 : i32, i32
  }
  func.func @transform_1(%arg0: i32) -> (i32, i32) {
    %c0_i32 = arith.constant 0 : i32
    %c0_i32_0 = arith.constant 0 : i32
    %c0_i32_1 = arith.constant 0 : i32
    return %c0_i32, %c0_i32_0 : i32, i32
  }
  func.func @transform_2(%arg0: i32) -> (i32, i32) {
    %c0_i32 = arith.constant 0 : i32
    %c0_i32_0 = arith.constant 0 : i32
    %c0_i32_1 = arith.constant 0 : i32
    return %c0_i32, %c0_i32_0 : i32, i32
  }
  func.func @transform_3(%arg0: i32) -> (i32, i32) {
    %c0_i32 = arith.constant 0 : i32
    %c0_i32_0 = arith.constant 0 : i32
    %c0_i32_1 = arith.constant 0 : i32
    return %c0_i32, %c0_i32_0 : i32, i32
  }
  func.func @transform_4(%arg0: i32) -> (i32, i32, i32) {
    %c0_i32 = arith.constant 0 : i32
    %c0_i32_0 = arith.constant 0 : i32
    %c0_i32_1 = arith.constant 0 : i32
    %c0_i32_2 = arith.constant 0 : i32
    return %c0_i32, %c0_i32_0, %c0_i32_1 : i32, i32, i32
  }
  func.func @transform_5(%arg0: i32) -> (i32, i32) {
    %c0_i32 = arith.constant 0 : i32
    %c0_i32_0 = arith.constant 0 : i32
    %c0_i32_1 = arith.constant 0 : i32
    return %c0_i32, %c0_i32_0 : i32, i32
  }
  func.func @transform_6(%arg0: i32) -> (i32, i32) {
    %c0_i32 = arith.constant 0 : i32
    %c0_i32_0 = arith.constant 0 : i32
    %c0_i32_1 = arith.constant 0 : i32
    return %c0_i32, %c0_i32_0 : i32, i32
  }
  func.func @transform_7(%arg0: i32) -> (i32, i32) {
    %c0_i32 = arith.constant 0 : i32
    %c0_i32_0 = arith.constant 0 : i32
    %c0_i32_1 = arith.constant 0 : i32
    return %c0_i32, %c0_i32_0 : i32, i32
  }
  func.func @transform_8(%arg0: i32) -> (i32, i32) {
    %c0_i32 = arith.constant 0 : i32
    %c0_i32_0 = arith.constant 0 : i32
    %c0_i32_1 = arith.constant 0 : i32
    return %c0_i32, %c0_i32_0 : i32, i32
  }
  func.func @transform_9(%arg0: i32) -> (i32, i32) {
    %c0_i32 = arith.constant 0 : i32
    %c0_i32_0 = arith.constant 0 : i32
    %c0_i32_1 = arith.constant 0 : i32
    return %c0_i32, %c0_i32_0 : i32, i32
  }
}

</mosaic_0001>

<bundles_post_ra>
// kernel: tpu_custom_call.1
= control target key start
LH: loop header
LB: loop body
LE: loop exit
PB: predicated region body
PF: predicated region fallthrough
CT: control target
= control target key end

     0   :  { %14 = vsyncpa [#allocation4], 0  ;;  %s1950_s0 = inlined_call_operand.vmem [shape: f32[72,32], index: 0, kind: input, shape index: {}]   ;;  %s1951_s1 = inlined_call_operand.vmem [shape: s32[8,1], index: 1, kind: input, shape index: {}]   ;;  %s1952_s2 = inlined_call_operand.vmem [shape: f32[32,256], index: 2, kind: input, shape index: {}]   ;;  %s1953_s3 = inlined_call_operand.hbm [shape: bf16[64,256], index: 3, kind: input, shape index: {}]   ;;  %s1954_s4 = inlined_call_operand.vmem [shape: f32[9,1,256], index: 4, kind: input, shape index: {}]   ;;  %s1955_s5 = inlined_call_operand.vmem [shape: f32[32,32], index: 5, kind: input, shape index: {}]   ;;  %s1956_s6 = inlined_call_operand.vmem [shape: f32[1,32], index: 6, kind: input, shape index: {}]   ;;  %s1957_s7 = inlined_call_operand.hbm [shape: f32[32,128], index: 7, kind: input, shape index: {}]   ;;  %s1958_s8 = inlined_call_operand.vmem [shape: f32[1,128], index: 8, kind: input, shape index: {}]   ;;  %s1959_s9 = inlined_call_operand.hbm [shape: f32[8,128], index: 9, kind: output, shape index: {}]  }
   0x1   :  { %15 = vsyncpa [#allocation7], 0 }
   0x2   :  { %16 = vsyncpa [#allocation5], 0  ;;  %s27_s11 = sshll.u32 %s1953_s3, 4  ;;  %s1530_s12 = smov [#allocation3]   ;;  %s28_s11 = int_to_ptr.hbm [resolvable:$true] %s27_s11 }
   0x3   :  { %s29_s13 = sshll.u32 %s1530_s12, 4  ;;  %s46_s16 = sshll.u32 %s1957_s7, 4  ;;  %s30_s13 = int_to_ptr.vmem [resolvable:$true] %s29_s13  ;;  %s47_s16 = int_to_ptr.hbm [resolvable:$true] %s46_s16 }
   0x4   :  { %s1531_s17 = smov 128   ;;  %s1532_s18 = smov 8  }
   0x5   :  { %35 = dma.hbm_to_vmem [thread:$0]  %s28_s11, 1024, %s30_s13, [#allocation4], %s1531_s17, %s1531_s17, %s1532_s18  }
   0x6   :  { %s1533_s19 = smov [#allocation6]  }
   0x7   :  { %s48_s20 = sshll.u32 %s1533_s19, 4  ;;  %s49_s20 = int_to_ptr.vmem [resolvable:$true] %s48_s20 }
   0x8   :  { %54 = dma.hbm_to_vmem [thread:$0]  %s47_s16, 512, %s49_s20, [#allocation7], %s1531_s17, %s1531_s17, %s1532_s18  }
   0x9   :  { %1524 = dma.done.wait [#allocation4], 1024  }
   0xa   :  { %1525 = vsyncadd [#allocation4], 4294966272 }
   0xb   :  { %1526 = dma.done.wait [#allocation7], 512  }
   0xc   :  { %1527 = vsyncadd [#allocation7], 4294966784  ;;  %v1534_v0 = vmov 0   ;;  %v1282_v1 = vld [vmem:[#allocation3 + $0x30] sm:$0xf]  ;;  %v88_v15 = vld [vmem:[%s1952_s2 + $0x20] sm:$0xff] }
   0xd   :  { %1339 = vset.pattern.permute.xlu2 %v1534_v0  ;;  %1340 = vset.pattern.permute.xlu0 %v1534_v0  ;;  %v1331_v2 = vld [vmem:[#allocation3 + $0x34] sm:$0xf0]  ;;  %v1274_v3 = vld [vmem:[#allocation3 + $0x20] sm:$0xf]  ;;  %v1329_v5 = vld [vmem:[#allocation3 + $0x24] sm:$0xf0] }
   0xe   :  { %1341 = vset.pattern.permute.xlu1 %v1534_v0  ;;  %v1596_v4 = vor.u32 %v1331_v2, %v1282_v1  ;;  %v1330_v6 = vld [vmem:[#allocation3 + $0x34] sm:$0xf]  ;;  %v1284_v7 = vld [vmem:[#allocation3 + $0x38] sm:$0xf0]  ;;  %v1602_v9 = vor.u32 %v1329_v5, %v1274_v3  ;;  %v1266_v10 = vld [vmem:[#allocation3 + $0x10] sm:$0xf] }
   0xf   :  { %v90_v8 = vld [vmem:[%s1952_s2 + $0x30] sm:$0xff]  ;;  %v1327_v11 = vld [vmem:[#allocation3 + $0x14] sm:$0xf0]  ;;  %v1604_v12 = vor.u32 %v1330_v6, %v1284_v7  ;;  %v1328_v13 = vld [vmem:[#allocation3 + $0x24] sm:$0xf]  ;;  %vm92_vm0 = vcmask 261120  }
  0x10   :  { %348 = vmatpush.bf16.msra.mxu2 %v1596_v4  ;;  %132 = vmatpush.msra.mxu0 %v90_v8  ;;  %v1276_v14 = vld [vmem:[#allocation3 + $0x28] sm:$0xf0]  ;;  %v86_v16 = vld [vmem:[%s1952_s2 + $0x10] sm:$0xff]  ;;  %v1268_v19 = vld [vmem:[#allocation3 + $0x18] sm:$0xf0]  ;;  %v1622_v22 = vor.u32 %v1327_v11, %v1266_v10  ;;  %s1535_s17 = smov 64  }
  0x11   :  { %361 = vmatpush.bf16.msra.mxu3 %v1604_v12  ;;  %v1613_v17 = vor.u32 %v1328_v13, %v1276_v14  ;;  %v1326_v18 = vld [vmem:[#allocation3 + $0x14] sm:$0xf]  ;;  %v84_v20 = vld [vmem:[%s1952_s2] sm:$0xff]  ;;  %v91_v21 = vld [vmem:[%s1952_s2 + $0x38] sm:$0xff]  ;;  %vm340_vm9 = vcmask 523264   ;;  %s1536_s13 = smov [#allocation8]  }
  0x12   :  { %133 = vmatpush.msra.mxu0 %v88_v15  ;;  %v1258_v23 = vld [vmem:[#allocation3] sm:$0xf]  ;;  %v89_v25 = vld [vmem:[%s1952_s2 + $0x28] sm:$0xff]  ;;  %176 = vmatpush.msra.mxu1 %v91_v21  ;;  %v1631_v27 = vor.u32 %v1326_v18, %v1268_v19  ;;  %v87_v28 = vld [vmem:[%s1952_s2 + $0x18] sm:$0xff]  ;;  %s1225_s14 = sshll.u32 %s1536_s13, 4  ;;  %s1226_s14 = int_to_ptr.vmem [resolvable:$true] %s1225_s14 }
  0x13   :  { %v75_v24 = vld [vmem:[%s1950_s0] sm:$0xff]  ;;  %v1325_v26 = vld [vmem:[#allocation3 + $0x4] sm:$0xf0]  ;;  %v1260_v30 = vld [vmem:[#allocation3 + $0x8] sm:$0xf0] }
  0x14   :  { %349 = vmatpush.bf16.msra.mxu2 %v1602_v9  ;;  %134 = vmatpush.msra.mxu0 %v86_v16  ;;  %v1324_v29 = vld [vmem:[#allocation3 + $0x4] sm:$0xf]  ;;  %v1638_v31 = vor.u32 %v1325_v26, %v1258_v23  ;;  %v85_v32 = vld [vmem:[%s1952_s2 + $0x8] sm:$0xff]  ;;  %v208_v34 = vld [vmem:[%s1954_s4] sm:$0x3] }
  0x15   :  { %362 = vmatpush.bf16.msra.mxu3 %v1613_v17  ;;  %177 = vmatpush.msra.mxu1 %v89_v25  ;;  %v1645_v33 = vor.u32 %v1324_v29, %v1260_v30  ;;  %v226_v35 = vperm.slane %v208_v34, 0  ;;  %v227_v46 = vperm.slane %v208_v34, 1  ;;  %v76_v23 = vld [vmem:[%s1950_s0 + $0x8] sm:$0xff]  ;;  %v209_v25 = vld [vmem:[%s1954_s4 + $0x2] sm:$0x3] }
  0x16   :  { %135 = vmatpush.msra.mxu0 %v84_v20  ;;  %v228_v26 = vperm.slane %v209_v25, 0 }
  0x17   :  { %1238 = vmatmul.msk.f32.vlgmr.msra.gmra.mxu0 %vm92_vm0, %v75_v24  ;;  %178 = vmatpush.msra.mxu1 %v87_v28 }
  0x18   :  { %350 = vmatpush.bf16.msra.mxu2 %v1622_v22  ;;  %712 = vmatpush.bf16.msrb.mxu0 %v1596_v4 }
  0x19   :  { %363 = vmatpush.bf16.msra.mxu3 %v1631_v27  ;;  %179 = vmatpush.msra.mxu1 %v85_v32 }
  0x1a   :  { %1247 = vmatmul.msk.f32.vlgmr.msra.gmra.mxu1 %vm92_vm0, %v75_v24 }
  0x1b   :  { %725 = vmatpush.bf16.msrb.mxu1 %v1604_v12 }
  0x1c   :  { %351 = vmatpush.bf16.msra.mxu2 %v1638_v31  ;;  %713 = vmatpush.bf16.msrb.mxu0 %v1602_v9 }
  0x1d   :  { %364 = vmatpush.bf16.msra.mxu3 %v1645_v33 }
  0x1f   :  { %352 = vmatmul.bf16.vlgmr.msra.gmra.mxu2 %v1534_v0  ;;  %726 = vmatpush.bf16.msrb.mxu1 %v1613_v17 }
  0x20   :  { %439 = vmatpush.bf16.msrb.mxu2 %v1596_v4  ;;  %365 = vmatmul.bf16.vlgmr.msra.gmra.mxu3 %v1534_v0 }
  0x21   :  { %452 = vmatpush.bf16.msrb.mxu3 %v1604_v12  ;;  %714 = vmatpush.bf16.msrb.mxu0 %v1622_v22 }
  0x22   :  { %1239 = vmatmul.msk.f32.gmra.mxu0 %vm92_vm0, %v76_v23  ;;  %1248 = vmatmul.msk.f32.gmra.mxu1 %vm92_vm0, %v76_v23 }
  0x23   :  { %727 = vmatpush.bf16.msrb.mxu1 %v1631_v27 }
  0x24   :  { %440 = vmatpush.bf16.msrb.mxu2 %v1602_v9 }
  0x25   :  { %453 = vmatpush.bf16.msrb.mxu3 %v1613_v17  ;;  %715 = vmatpush.bf16.msrb.mxu0 %v1638_v31 }
  0x27   :  { %728 = vmatpush.bf16.msrb.mxu1 %v1645_v33 }
  0x28   :  { %441 = vmatpush.bf16.msrb.mxu2 %v1622_v22 }
  0x29   :  { %454 = vmatpush.bf16.msrb.mxu3 %v1631_v27  ;;  %894 = vmatpush.bf16.msra.mxu0 %v1596_v4 }
  0x2b   :  { %907 = vmatpush.bf16.msra.mxu1 %v1604_v12 }
  0x2c   :  { %442 = vmatpush.bf16.msrb.mxu2 %v1638_v31 }
  0x2d   :  { %455 = vmatpush.bf16.msrb.mxu3 %v1645_v33  ;;  %895 = vmatpush.bf16.msra.mxu0 %v1602_v9 }
  0x2f   :  { %908 = vmatpush.bf16.msra.mxu1 %v1613_v17 }
  0x30   :  { %530 = vmatpush.bf16.msra.mxu2 %v1596_v4 }
  0x31   :  { %543 = vmatpush.bf16.msra.mxu3 %v1604_v12  ;;  %896 = vmatpush.bf16.msra.mxu0 %v1622_v22 }
  0x33   :  { %909 = vmatpush.bf16.msra.mxu1 %v1631_v27 }
  0x34   :  { %531 = vmatpush.bf16.msra.mxu2 %v1602_v9 }
  0x35   :  { %544 = vmatpush.bf16.msra.mxu3 %v1613_v17  ;;  %897 = vmatpush.bf16.msra.mxu0 %v1638_v31 }
  0x37   :  { %910 = vmatpush.bf16.msra.mxu1 %v1645_v33 }
  0x38   :  { %532 = vmatpush.bf16.msra.mxu2 %v1622_v22 }
  0x39   :  { %545 = vmatpush.bf16.msra.mxu3 %v1631_v27 }
  0x3c   :  { %533 = vmatpush.bf16.msra.mxu2 %v1638_v31 }
  0x3d   :  { %546 = vmatpush.bf16.msra.mxu3 %v1645_v33 }
  0x94   :  { %v137_v36 = vpop.f32.mrf.mxu0 }
  0x95   :  { %v262_v37 = vadd.f32 %v226_v35, %v137_v36 }
  0x97   :  { %v181_v47 = vpop.f32.mrf.mxu1 }
  0x98   :  { %v263_v48 = vadd.f32 %v227_v46, %v181_v47 }
  0x9f   :  { %v140_v28 = vpop.f32.mrf.mxu0 }
  0xa0   :  { %v264_v29 = vadd.f32 %v228_v26, %v140_v28 }
  0xa2   :  { %v353_v38 = vpop.f32.mrf.mxu2 }
  0xa3   :  { %v354_v39 = vadd.f32 %v353_v38, %v262_v37  ;;  %v366_v40 = vpop.f32.mrf.mxu3 }
  0xa4   :  { %v367_v50 = vadd.f32 %v366_v40, %v263_v48 }
  0xa5   :  { %v1288_v41 = vmul.f32 -1.442695, %v354_v39  ;;  %v229_v39 = vperm.slane %v209_v25, 1 }
  0xa6   :  { %v1289_v62 = vmul.f32 -1.442695, %v367_v50 }
  0xa7   :  { %1344 = vpow2.f32 %v1288_v41  ;;  %v184_v41 = vpop.f32.mrf.mxu1 }
  0xaa   :  { %v355_v42 = vpop.f32.mrf.mxu2 }
  0xab   :  { %v368_v43 = vpop.f32.mrf.mxu3  ;;  %v265_v42 = vadd.f32 %v229_v39, %v184_v41 }
  0xad   :  { %v1345_v44 = vpop.eup %1344 }
  0xae   :  { %v376_v45 = vadd.f32 1.0, %v1345_v44 }
  0xb0   :  { %1346 = vrcp.f32 %v376_v45  ;;  %v389_v53 = vand.u32 2147483648, %v376_v45  ;;  %v387_v55 = vand.u32 2147483647, %v376_v45  ;;  %vm383_vm2 = vweird.f32 %v376_v45 }
  0xb1   :  { %1348 = vtanh.f32 %v367_v50 }
  0xb2   :  { %v390_v58 = vor.u32 1.1754944e-38, %v389_v53  ;;  %vm388_vm4 = vcmp.eq.f32.partialorder %v387_v55, 8.507059e+37  ;;  %1350 = vpow2.f32 %v1289_v62 }
  0xb6   :  { %v1347_v49 = vpop.eup %1346 }
  0xb7   :  { %v379_v51 = vmul.f32 %v1347_v49, %v376_v45  ;;  %vm384_vm1 = vweird.f32 %v1347_v49  ;;  %v1349_v57 = vpop.eup %1348 }
  0xb8   :  { %vm385_vm3 = vmor %vm383_vm2, %vm384_vm1  ;;  %v1351_v63 = vpop.eup %1350 }
  0xb9   :  { %v380_v52 = vsub.f32 1.0, %v379_v51  ;;  %v377_v1 = vadd.f32 1.0, %v1351_v63 }
  0xbb   :  { %v381_v54 = vmul.f32 %v1347_v49, %v380_v52  ;;  %1352 = vrcp.f32 %v377_v1  ;;  %vm398_vm5 = vweird.f32 %v377_v1  ;;  %v404_v11 = vand.u32 2147483648, %v377_v1 }
  0xbc   :  { %v402_v14 = vand.u32 2147483647, %v377_v1 }
  0xbd   :  { %v382_v56 = vadd.f32 %v1347_v49, %v381_v54  ;;  %v405_v15 = vor.u32 1.1754944e-38, %v404_v11 }
  0xbe   :  { %vm403_vm8 = vcmp.eq.f32.partialorder %v402_v14, 8.507059e+37 }
  0xbf   :  { %v386_v59 = vsel %vm385_vm3, %v1347_v49, %v382_v56 }
  0xc0   :  { %v391_v60 = vsel %vm388_vm4, %v390_v58, %v386_v59 }
  0xc1   :  { %v410_v61 = vmul.f32 %v1349_v57, %v391_v60  ;;  %v1353_v2 = vpop.eup %1352  ;;  %v409_v7 = vmul.f32 0.0, %v391_v60 }
  0xc2   :  { %v394_v3 = vmul.f32 %v1353_v2, %v377_v1  ;;  %vm399_vm6 = vweird.f32 %v1353_v2 }
  0xc3   :  { %412 = vrot.lane.b32.xlu0 %v410_v61, %s1535_s17  ;;  %vm400_vm7 = vmor %vm398_vm5, %vm399_vm6 }
  0xc4   :  { %v395_v5 = vsub.f32 1.0, %v394_v3 }
  0xc6   :  { %v396_v6 = vmul.f32 %v1353_v2, %v395_v5 }
  0xc8   :  { %v397_v13 = vadd.f32 %v1353_v2, %v396_v6 }
  0xca   :  { %v401_v16 = vsel %vm400_vm7, %v1353_v2, %v397_v13 }
  0xcb   :  { %v406_v19 = vsel %vm403_vm8, %v405_v15, %v401_v16  ;;  %v77_v15 = vld [vmem:[%s1950_s0 + $0x10] sm:$0xff] }
  0xcc   :  { %1240 = vmatmul.msk.f32.gmra.mxu0 %vm92_vm0, %v77_v15  ;;  %1249 = vmatmul.msk.f32.gmra.mxu1 %vm92_vm0, %v77_v15 }
 0x135   :  { %v413_v8 = vpop.permute.xlu0 %412 }
 0x136   :  { %v1687_v10 = vadd.f32 %v413_v8, %v409_v7 }
 0x138   :  { %1354 = vtanh.f32 %v1687_v10 }
 0x13e   :  { %v1355_v18 = vpop.eup %1354 }
 0x13f   :  { %v1690_v20 = vmul.f32 %v1355_v18, %v406_v19  ;;  %v210_v18 = vld [vmem:[%s1954_s4 + $0x4] sm:$0x3] }
 0x140   :  { %v230_v19 = vperm.slane %v210_v18, 0 }
 0x141   :  { %v425_v21 = vpack.c.bf16 %v1690_v20, %v1690_v20 }
 0x143   :  { %430 = vrot.lane.b32.xlu0 %v425_v21, %s1535_s17 }
 0x149   :  { %v143_v21 = vpop.f32.mrf.mxu0 }
 0x14a   :  { %v266_v23 = vadd.f32 %v230_v19, %v143_v21 }
 0x1b5   :  { %v431_v24 = vpop.permute.xlu0 %430 }
 0x1b6   :  { %1290 = vmatmul.msk.bf16.vlgmr.msrb.gmra.mxu2 %vm340_vm9, %v431_v24  ;;  %1291 = vmatmul.msk.bf16.vlgmr.msrb.gmra.mxu3 %vm340_vm9, %v431_v24 }
 0x1b7   :  { %621 = vmatpush.bf16.msrb.mxu2 %v1596_v4  ;;  %634 = vmatpush.bf16.msrb.mxu3 %v1604_v12 }
 0x1bb   :  { %622 = vmatpush.bf16.msrb.mxu2 %v1602_v9  ;;  %635 = vmatpush.bf16.msrb.mxu3 %v1613_v17 }
 0x1bf   :  { %623 = vmatpush.bf16.msrb.mxu2 %v1622_v22  ;;  %636 = vmatpush.bf16.msrb.mxu3 %v1631_v27 }
 0x1c3   :  { %624 = vmatpush.bf16.msrb.mxu2 %v1638_v31  ;;  %637 = vmatpush.bf16.msrb.mxu3 %v1645_v33 }
 0x239   :  { %v444_v30 = vpop.f32.mrf.mxu2  ;;  %v457_v32 = vpop.f32.mrf.mxu3 }
 0x23a   :  { %v445_v34 = vadd.f32 %v444_v30, %v264_v29  ;;  %v458_v44 = vadd.f32 %v457_v32, %v265_v42 }
 0x23c   :  { %v1292_v35 = vmul.f32 -1.442695, %v445_v34  ;;  %v1293_v56 = vmul.f32 -1.442695, %v458_v44  ;;  %v231_v34 = vperm.slane %v210_v18, 1 }
 0x23e   :  { %1356 = vpow2.f32 %v1292_v35 }
 0x241   :  { %v446_v36 = vpop.f32.mrf.mxu2  ;;  %v459_v37 = vpop.f32.mrf.mxu3 }
 0x242   :  { %v187_v36 = vpop.f32.mrf.mxu1 }
 0x243   :  { %v267_v37 = vadd.f32 %v231_v34, %v187_v36 }
 0x244   :  { %v1357_v38 = vpop.eup %1356 }
 0x245   :  { %v467_v40 = vadd.f32 1.0, %v1357_v38 }
 0x247   :  { %1358 = vrcp.f32 %v467_v40  ;;  %v480_v47 = vand.u32 2147483648, %v467_v40  ;;  %v478_v49 = vand.u32 2147483647, %v467_v40  ;;  %vm474_vm11 = vweird.f32 %v467_v40 }
 0x248   :  { %1360 = vtanh.f32 %v458_v44 }
 0x249   :  { %v481_v51 = vor.u32 1.1754944e-38, %v480_v47  ;;  %vm479_vm13 = vcmp.eq.f32.partialorder %v478_v49, 8.507059e+37  ;;  %1362 = vpow2.f32 %v1293_v56 }
 0x24d   :  { %v1359_v43 = vpop.eup %1358 }
 0x24e   :  { %v470_v45 = vmul.f32 %v1359_v43, %v467_v40  ;;  %vm475_vm10 = vweird.f32 %v1359_v43  ;;  %v1361_v53 = vpop.eup %1360 }
 0x24f   :  { %vm476_vm12 = vmor %vm474_vm11, %vm475_vm10  ;;  %v1363_v57 = vpop.eup %1362 }
 0x250   :  { %v471_v46 = vsub.f32 1.0, %v470_v45  ;;  %v468_v58 = vadd.f32 1.0, %v1363_v57 }
 0x252   :  { %v472_v48 = vmul.f32 %v1359_v43, %v471_v46  ;;  %1364 = vrcp.f32 %v468_v58  ;;  %v495_v5 = vand.u32 2147483648, %v468_v58  ;;  %vm489_vm15 = vweird.f32 %v468_v58 }
 0x253   :  { %v493_v6 = vand.u32 2147483647, %v468_v58 }
 0x254   :  { %v473_v50 = vadd.f32 %v1359_v43, %v472_v48  ;;  %v496_v8 = vor.u32 1.1754944e-38, %v495_v5 }
 0x255   :  { %vm494_vm2 = vcmp.eq.f32.partialorder %v493_v6, 8.507059e+37 }
 0x256   :  { %v477_v52 = vsel %vm476_vm12, %v1359_v43, %v473_v50 }
 0x257   :  { %v482_v54 = vsel %vm479_vm13, %v481_v51, %v477_v52 }
 0x258   :  { %v501_v55 = vmul.f32 %v1361_v53, %v482_v54  ;;  %v1365_v59 = vpop.eup %1364  ;;  %v500_v63 = vmul.f32 %v482_v54, %v1687_v10 }
 0x259   :  { %v485_v60 = vmul.f32 %v1365_v59, %v468_v58  ;;  %vm490_vm14 = vweird.f32 %v1365_v59 }
 0x25a   :  { %503 = vrot.lane.b32.xlu1 %v501_v55, %s1535_s17  ;;  %vm491_vm1 = vmor %vm489_vm15, %vm490_vm14 }
 0x25b   :  { %v486_v61 = vsub.f32 1.0, %v485_v60 }
 0x25d   :  { %v487_v62 = vmul.f32 %v1365_v59, %v486_v61 }
 0x25f   :  { %v488_v3 = vadd.f32 %v1365_v59, %v487_v62 }
 0x261   :  { %v492_v7 = vsel %vm491_vm1, %v1365_v59, %v488_v3 }
 0x262   :  { %v497_v13 = vsel %vm494_vm2, %v496_v8, %v492_v7  ;;  %v78_v8 = vld [vmem:[%s1950_s0 + $0x18] sm:$0xff] }
 0x263   :  { %1241 = vmatmul.msk.f32.gmra.mxu0 %vm92_vm0, %v78_v8  ;;  %1250 = vmatmul.msk.f32.gmra.mxu1 %vm92_vm0, %v78_v8 }
 0x2cc   :  { %v504_v1 = vpop.permute.xlu1 %503 }
 0x2cd   :  { %v1715_v2 = vadd.f32 %v504_v1, %v500_v63 }
 0x2cf   :  { %1366 = vtanh.f32 %v1715_v2 }
 0x2d5   :  { %v1367_v11 = vpop.eup %1366 }
 0x2d6   :  { %v1718_v14 = vmul.f32 %v1367_v11, %v497_v13  ;;  %v211_v13 = vld [vmem:[%s1954_s4 + $0x6] sm:$0x3] }
 0x2d8   :  { %v516_v10 = vpack.c.bf16 %v1718_v14, %v1718_v14 }
 0x2da   :  { %521 = vrot.lane.b32.xlu1 %v516_v10, %s1535_s17  ;;  %v232_v10 = vperm.slane %v211_v13, 0 }
 0x2e0   :  { %v146_v15 = vpop.f32.mrf.mxu0 }
 0x34c   :  { %v522_v16 = vpop.permute.xlu1 %521 }
 0x34d   :  { %1294 = vmatmul.msk.bf16.vlgmr.msra.gmra.mxu2 %vm340_vm9, %v522_v16  ;;  %1295 = vmatmul.msk.bf16.vlgmr.msra.gmra.mxu3 %vm340_vm9, %v522_v16  ;;  %v268_v16 = vadd.f32 %v232_v10, %v146_v15 }
 0x34e   :  { %803 = vmatpush.bf16.msra.mxu2 %v1596_v4  ;;  %816 = vmatpush.bf16.msra.mxu3 %v1604_v12 }
 0x352   :  { %804 = vmatpush.bf16.msra.mxu2 %v1602_v9  ;;  %817 = vmatpush.bf16.msra.mxu3 %v1613_v17 }
 0x356   :  { %805 = vmatpush.bf16.msra.mxu2 %v1622_v22  ;;  %818 = vmatpush.bf16.msra.mxu3 %v1631_v27 }
 0x35a   :  { %806 = vmatpush.bf16.msra.mxu2 %v1638_v31  ;;  %819 = vmatpush.bf16.msra.mxu3 %v1645_v33 }
 0x3d0   :  { %v535_v24 = vpop.f32.mrf.mxu2  ;;  %v548_v25 = vpop.f32.mrf.mxu3 }
 0x3d1   :  { %v536_v26 = vadd.f32 %v535_v24, %v266_v23  ;;  %v549_v39 = vadd.f32 %v548_v25, %v267_v37 }
 0x3d3   :  { %v1296_v28 = vmul.f32 -1.442695, %v536_v26  ;;  %v1297_v51 = vmul.f32 -1.442695, %v549_v39 }
 0x3d5   :  { %1368 = vpow2.f32 %v1296_v28  ;;  %v233_v28 = vperm.slane %v211_v13, 1 }
 0x3d8   :  { %v537_v29 = vpop.f32.mrf.mxu2  ;;  %v550_v30 = vpop.f32.mrf.mxu3 }
 0x3d9   :  { %v190_v30 = vpop.f32.mrf.mxu1 }
 0x3db   :  { %v1369_v32 = vpop.eup %1368 }
 0x3dc   :  { %v558_v35 = vadd.f32 1.0, %v1369_v32  ;;  %v269_v32 = vadd.f32 %v233_v28, %v190_v30 }
 0x3de   :  { %1370 = vrcp.f32 %v558_v35  ;;  %v571_v42 = vand.u32 2147483648, %v558_v35  ;;  %v569_v44 = vand.u32 2147483647, %v558_v35  ;;  %vm565_vm4 = vweird.f32 %v558_v35 }
 0x3df   :  { %1372 = vtanh.f32 %v549_v39 }
 0x3e0   :  { %v572_v46 = vor.u32 1.1754944e-38, %v571_v42  ;;  %vm570_vm6 = vcmp.eq.f32.partialorder %v569_v44, 8.507059e+37  ;;  %1374 = vpow2.f32 %v1297_v51 }
 0x3e4   :  { %v1371_v38 = vpop.eup %1370 }
 0x3e5   :  { %v561_v40 = vmul.f32 %v1371_v38, %v558_v35  ;;  %vm566_vm3 = vweird.f32 %v1371_v38  ;;  %v1373_v48 = vpop.eup %1372 }
 0x3e6   :  { %vm567_vm5 = vmor %vm565_vm4, %vm566_vm3  ;;  %v1375_v52 = vpop.eup %1374 }
 0x3e7   :  { %v562_v41 = vsub.f32 1.0, %v561_v40  ;;  %v559_v53 = vadd.f32 1.0, %v1375_v52  ;;  %v80_v52 = vld [vmem:[%s1950_s0 + $0x28] sm:$0xff] }
 0x3e9   :  { %v563_v43 = vmul.f32 %v1371_v38, %v562_v41  ;;  %1376 = vrcp.f32 %v559_v53  ;;  %v586_v62 = vand.u32 2147483648, %v559_v53  ;;  %vm580_vm8 = vweird.f32 %v559_v53 }
 0x3ea   :  { %v584_v63 = vand.u32 2147483647, %v559_v53 }
 0x3eb   :  { %v564_v45 = vadd.f32 %v1371_v38, %v563_v43  ;;  %v587_v3 = vor.u32 1.1754944e-38, %v586_v62 }
 0x3ec   :  { %vm585_vm11 = vcmp.eq.f32.partialorder %v584_v63, 8.507059e+37 }
 0x3ed   :  { %v568_v47 = vsel %vm567_vm5, %v1371_v38, %v564_v45 }
 0x3ee   :  { %v573_v49 = vsel %vm570_vm6, %v572_v46, %v568_v47 }
 0x3ef   :  { %v592_v50 = vmul.f32 %v1373_v48, %v573_v49  ;;  %v1377_v54 = vpop.eup %1376  ;;  %v591_v58 = vmul.f32 %v573_v49, %v1715_v2 }
 0x3f0   :  { %v576_v55 = vmul.f32 %v1377_v54, %v559_v53  ;;  %vm581_vm7 = vweird.f32 %v1377_v54 }
 0x3f1   :  { %594 = vrot.lane.b32.xlu2 %v592_v50, %s1535_s17  ;;  %vm582_vm10 = vmor %vm580_vm8, %vm581_vm7  ;;  %v79_v50 = vld [vmem:[%s1950_s0 + $0x20] sm:$0xff] }
 0x3f2   :  { %v577_v56 = vsub.f32 1.0, %v576_v55  ;;  %1242 = vmatmul.msk.f32.gmra.mxu0 %vm92_vm0, %v79_v50  ;;  %1251 = vmatmul.msk.f32.gmra.mxu1 %vm92_vm0, %v79_v50  ;;  %v81_v55 = vld [vmem:[%s1950_s0 + $0x30] sm:$0xff] }
 0x3f4   :  { %v578_v57 = vmul.f32 %v1377_v54, %v577_v56 }
 0x3f6   :  { %v579_v61 = vadd.f32 %v1377_v54, %v578_v57 }
 0x3f8   :  { %v583_v1 = vsel %vm582_vm10, %v1377_v54, %v579_v61 }
 0x3f9   :  { %v588_v6 = vsel %vm585_vm11, %v587_v3, %v583_v1  ;;  %v82_v1 = vld [vmem:[%s1950_s0 + $0x38] sm:$0xff] }
 0x3fa   :  { %1243 = vmatmul.msk.f32.gmra.mxu0 %vm92_vm0, %v80_v52  ;;  %1252 = vmatmul.msk.f32.gmra.mxu1 %vm92_vm0, %v80_v52 }
 0x402   :  { %1244 = vmatmul.msk.f32.gmra.mxu0 %vm92_vm0, %v81_v55  ;;  %1253 = vmatmul.msk.f32.gmra.mxu1 %vm92_vm0, %v81_v55 }
 0x40a   :  { %1245 = vmatmul.msk.f32.gmra.mxu0 %vm92_vm0, %v82_v1  ;;  %1254 = vmatmul.msk.f32.gmra.mxu1 %vm92_vm0, %v82_v1 }
 0x44b   :  { %v595_v59 = vpop.permute.xlu2 %594 }
 0x44c   :  { %v1743_v60 = vadd.f32 %v595_v59, %v591_v58 }
 0x44e   :  { %1378 = vtanh.f32 %v1743_v60 }
 0x454   :  { %v1379_v5 = vpop.eup %1378 }
 0x455   :  { %v1746_v7 = vmul.f32 %v1379_v5, %v588_v6 }
 0x457   :  { %v607_v2 = vpack.c.bf16 %v1746_v7, %v1746_v7 }
 0x459   :  { %612 = vrot.lane.b32.xlu2 %v607_v2, %s1535_s17 }
 0x46f   :  { %v149_v10 = vpop.f32.mrf.mxu0  ;;  %v193_v15 = vpop.f32.mrf.mxu1 }
 0x4b3   :  { %v613_v11 = vpop.permute.xlu2 %612 }
 0x4b4   :  { %1298 = vmatmul.msk.bf16.vlgmr.msrb.gmra.mxu2 %vm340_vm9, %v613_v11  ;;  %1299 = vmatmul.msk.bf16.vlgmr.msrb.gmra.mxu3 %vm340_vm9, %v613_v11  ;;  %v83_v11 = vld [vmem:[%s1950_s0 + $0x40] sm:$0xff]  ;;  %s1227_s0 = sshll.u32 %s1959_s9, 4  ;;  %s1228_s0 = int_to_ptr.hbm [resolvable:$true] %s1227_s0 }
 0x4b5   :  { %985 = vmatpush.bf16.msrb.mxu2 %v1596_v4  ;;  %998 = vmatpush.bf16.msrb.mxu3 %v1604_v12 }
 0x4b6   :  { %1246 = vmatmul.msk.f32.gmra.mxu0 %vm92_vm0, %v83_v11  ;;  %1255 = vmatmul.msk.f32.gmra.mxu1 %vm92_vm0, %v83_v11 }
 0x4b9   :  { %986 = vmatpush.bf16.msrb.mxu2 %v1602_v9  ;;  %999 = vmatpush.bf16.msrb.mxu3 %v1613_v17 }
 0x4bd   :  { %987 = vmatpush.bf16.msrb.mxu2 %v1622_v22  ;;  %1000 = vmatpush.bf16.msrb.mxu3 %v1631_v27 }
 0x4c1   :  { %988 = vmatpush.bf16.msrb.mxu2 %v1638_v31  ;;  %1001 = vmatpush.bf16.msrb.mxu3 %v1645_v33 }
 0x537   :  { %v626_v18 = vpop.f32.mrf.mxu2  ;;  %v639_v19 = vpop.f32.mrf.mxu3 }
 0x538   :  { %v627_v21 = vadd.f32 %v626_v18, %v268_v16  ;;  %v640_v35 = vadd.f32 %v639_v19, %v269_v32  ;;  %v1814_v16 = vpop.f32.mrf.mxu0  ;;  %v1816_v18 = vpop.f32.mrf.mxu1 }
 0x53a   :  { %v1300_v23 = vmul.f32 -1.442695, %v627_v21  ;;  %v1301_v47 = vmul.f32 -1.442695, %v640_v35 }
 0x53c   :  { %1380 = vpow2.f32 %v1300_v23 }
 0x53f   :  { %v628_v24 = vpop.f32.mrf.mxu2  ;;  %v641_v25 = vpop.f32.mrf.mxu3 }
 0x542   :  { %v1381_v26 = vpop.eup %1380 }
 0x543   :  { %v649_v29 = vadd.f32 1.0, %v1381_v26 }
 0x545   :  { %1382 = vrcp.f32 %v649_v29  ;;  %v662_v38 = vand.u32 2147483648, %v649_v29  ;;  %v660_v40 = vand.u32 2147483647, %v649_v29  ;;  %vm656_vm13 = vweird.f32 %v649_v29 }
 0x546   :  { %1384 = vtanh.f32 %v640_v35 }
 0x547   :  { %v663_v42 = vor.u32 1.1754944e-38, %v662_v38  ;;  %vm661_vm15 = vcmp.eq.f32.partialorder %v660_v40, 8.507059e+37  ;;  %1386 = vpow2.f32 %v1301_v47 }
 0x54b   :  { %v1383_v34 = vpop.eup %1382 }
 0x54c   :  { %v652_v36 = vmul.f32 %v1383_v34, %v649_v29  ;;  %vm657_vm12 = vweird.f32 %v1383_v34  ;;  %v1385_v44 = vpop.eup %1384 }
 0x54d   :  { %vm658_vm14 = vmor %vm656_vm13, %vm657_vm12  ;;  %v1387_v48 = vpop.eup %1386 }
 0x54e   :  { %v653_v37 = vsub.f32 1.0, %v652_v36  ;;  %v650_v49 = vadd.f32 1.0, %v1387_v48 }
 0x550   :  { %v654_v39 = vmul.f32 %v1383_v34, %v653_v37  ;;  %1388 = vrcp.f32 %v650_v49  ;;  %v677_v62 = vand.u32 2147483648, %v650_v49  ;;  %vm671_vm2 = vweird.f32 %v650_v49 }
 0x551   :  { %v675_v63 = vand.u32 2147483647, %v650_v49 }
 0x552   :  { %v655_v41 = vadd.f32 %v1383_v34, %v654_v39  ;;  %v678_v3 = vor.u32 1.1754944e-38, %v677_v62 }
 0x553   :  { %vm676_vm4 = vcmp.eq.f32.partialorder %v675_v63, 8.507059e+37 }
 0x554   :  { %v659_v43 = vsel %vm658_vm14, %v1383_v34, %v655_v41 }
 0x555   :  { %v664_v45 = vsel %vm661_vm15, %v663_v42, %v659_v43 }
 0x556   :  { %v683_v46 = vmul.f32 %v1385_v44, %v664_v45  ;;  %v1389_v51 = vpop.eup %1388  ;;  %v682_v57 = vmul.f32 %v664_v45, %v1743_v60 }
 0x557   :  { %v667_v53 = vmul.f32 %v1389_v51, %v650_v49  ;;  %vm672_vm1 = vweird.f32 %v1389_v51 }
 0x558   :  { %685 = vrot.lane.b32.xlu0 %v683_v46, %s1535_s17  ;;  %vm673_vm3 = vmor %vm671_vm2, %vm672_vm1 }
 0x559   :  { %v668_v54 = vsub.f32 1.0, %v667_v53 }
 0x55b   :  { %v669_v56 = vmul.f32 %v1389_v51, %v668_v54 }
 0x55d   :  { %v670_v61 = vadd.f32 %v1389_v51, %v669_v56 }
 0x55f   :  { %v674_v60 = vsel %vm673_vm3, %v1389_v51, %v670_v61 }
 0x560   :  { %v679_v6 = vsel %vm676_vm4, %v678_v3, %v674_v60 }
 0x5ca   :  { %v686_v58 = vpop.permute.xlu0 %685 }
 0x5cb   :  { %v1786_v59 = vadd.f32 %v686_v58, %v682_v57 }
 0x5cd   :  { %1390 = vtanh.f32 %v1786_v59 }
 0x5d3   :  { %v1391_v5 = vpop.eup %1390 }
 0x5d4   :  { %v1794_v2 = vmul.f32 %v1391_v5, %v679_v6 }
 0x5d6   :  { %v698_v8 = vpack.c.bf16 %v1794_v2, %v1794_v2 }
 0x5d8   :  { %703 = vrot.lane.b32.xlu1 %v698_v8, %s1535_s17  ;;  %v213_v8 = vld [vmem:[%s1954_s4 + $0xa] sm:$0x3] }
 0x5d9   :  { %v236_v11 = vperm.slane %v213_v8, 0 }
 0x64a   :  { %v704_v13 = vpop.permute.xlu1 %703 }
 0x64b   :  { %1302 = vmatmul.msk.bf16.vlgmr.msrb.gmra.mxu0 %vm340_vm9, %v704_v13  ;;  %1303 = vmatmul.msk.bf16.vlgmr.msrb.gmra.mxu1 %vm340_vm9, %v704_v13  ;;  %v272_v13 = vadd.f32 %v236_v11, %v1814_v16 }
 0x64c   :  { %1076 = vmatpush.bf16.msrb.mxu0 %v1596_v4  ;;  %1089 = vmatpush.bf16.msrb.mxu1 %v1604_v12  ;;  %v1818_v4 = vpop.f32.mrf.mxu0  ;;  %v1820_v12 = vpop.f32.mrf.mxu1 }
 0x650   :  { %1077 = vmatpush.bf16.msrb.mxu0 %v1602_v9  ;;  %1090 = vmatpush.bf16.msrb.mxu1 %v1613_v17 }
 0x654   :  { %1078 = vmatpush.bf16.msrb.mxu0 %v1622_v22  ;;  %1091 = vmatpush.bf16.msrb.mxu1 %v1631_v27  ;;  %v1822_v9 = vpop.f32.mrf.mxu0  ;;  %v1824_v17 = vpop.f32.mrf.mxu1 }
 0x658   :  { %1079 = vmatpush.bf16.msrb.mxu0 %v1638_v31  ;;  %1092 = vmatpush.bf16.msrb.mxu1 %v1645_v33  ;;  %v212_v31 = vld [vmem:[%s1954_s4 + $0x8] sm:$0x3] }
 0x659   :  { %v234_v33 = vperm.slane %v212_v31, 0  ;;  %v235_v32 = vperm.slane %v212_v31, 1 }
 0x65b   :  { %v270_v19 = vadd.f32 %v234_v33, %v149_v10  ;;  %v271_v34 = vadd.f32 %v235_v32, %v193_v15 }
 0x65c   :  { %v1826_v22 = vpop.f32.mrf.mxu0  ;;  %v1828_v27 = vpop.f32.mrf.mxu1 }
 0x6c8   :  { %v717_v21 = vpop.f32.mrf.mxu0  ;;  %v730_v23 = vpop.f32.mrf.mxu1 }
 0x6c9   :  { %v718_v24 = vadd.f32 %v717_v21, %v270_v19  ;;  %v731_v36 = vadd.f32 %v730_v23, %v271_v34 }
 0x6cb   :  { %v1304_v25 = vmul.f32 -1.442695, %v718_v24  ;;  %v1305_v48 = vmul.f32 -1.442695, %v731_v36 }
 0x6cd   :  { %1392 = vpow2.f32 %v1304_v25  ;;  %v237_v25 = vperm.slane %v213_v8, 1 }
 0x6d0   :  { %v719_v26 = vpop.f32.mrf.mxu0  ;;  %v732_v28 = vpop.f32.mrf.mxu1 }
 0x6d1   :  { %v273_v26 = vadd.f32 %v237_v25, %v1816_v18 }
 0x6d3   :  { %v1393_v29 = vpop.eup %1392 }
 0x6d4   :  { %v740_v30 = vadd.f32 1.0, %v1393_v29 }
 0x6d6   :  { %1394 = vrcp.f32 %v740_v30  ;;  %v753_v39 = vand.u32 2147483648, %v740_v30  ;;  %v751_v41 = vand.u32 2147483647, %v740_v30  ;;  %vm747_vm6 = vweird.f32 %v740_v30 }
 0x6d7   :  { %1396 = vtanh.f32 %v731_v36 }
 0x6d8   :  { %v754_v43 = vor.u32 1.1754944e-38, %v753_v39  ;;  %vm752_vm8 = vcmp.eq.f32.partialorder %v751_v41, 8.507059e+37  ;;  %1398 = vpow2.f32 %v1305_v48 }
 0x6dc   :  { %v1395_v35 = vpop.eup %1394 }
 0x6dd   :  { %v743_v37 = vmul.f32 %v1395_v35, %v740_v30  ;;  %vm748_vm5 = vweird.f32 %v1395_v35  ;;  %v1397_v45 = vpop.eup %1396 }
 0x6de   :  { %vm749_vm7 = vmor %vm747_vm6, %vm748_vm5  ;;  %v1399_v49 = vpop.eup %1398 }
 0x6df   :  { %v744_v38 = vsub.f32 1.0, %v743_v37  ;;  %v741_v50 = vadd.f32 1.0, %v1399_v49 }
 0x6e1   :  { %v745_v40 = vmul.f32 %v1395_v35, %v744_v38  ;;  %1400 = vrcp.f32 %v741_v50  ;;  %v768_v61 = vand.u32 2147483648, %v741_v50  ;;  %vm762_vm11 = vweird.f32 %v741_v50 }
 0x6e2   :  { %v766_v62 = vand.u32 2147483647, %v741_v50 }
 0x6e3   :  { %v746_v42 = vadd.f32 %v1395_v35, %v745_v40  ;;  %v769_v1 = vor.u32 1.1754944e-38, %v768_v61 }
 0x6e4   :  { %vm767_vm13 = vcmp.eq.f32.partialorder %v766_v62, 8.507059e+37 }
 0x6e5   :  { %v750_v44 = vsel %vm749_vm7, %v1395_v35, %v746_v42 }
 0x6e6   :  { %v755_v46 = vsel %vm752_vm8, %v754_v43, %v750_v44 }
 0x6e7   :  { %v774_v47 = vmul.f32 %v1397_v45, %v755_v46  ;;  %v1401_v51 = vpop.eup %1400  ;;  %v773_v55 = vmul.f32 %v755_v46, %v1786_v59 }
 0x6e8   :  { %v758_v52 = vmul.f32 %v1401_v51, %v741_v50  ;;  %vm763_vm10 = vweird.f32 %v1401_v51 }
 0x6e9   :  { %776 = vrot.lane.b32.xlu2 %v774_v47, %s1535_s17  ;;  %vm764_vm12 = vmor %vm762_vm11, %vm763_vm10 }
 0x6ea   :  { %v759_v53 = vsub.f32 1.0, %v758_v52 }
 0x6ec   :  { %v760_v54 = vmul.f32 %v1401_v51, %v759_v53 }
 0x6ee   :  { %v761_v58 = vadd.f32 %v1401_v51, %v760_v54 }
 0x6f0   :  { %v765_v63 = vsel %vm764_vm12, %v1401_v51, %v761_v58 }
 0x6f1   :  { %v770_v3 = vsel %vm767_vm13, %v769_v1, %v765_v63  ;;  %v214_v63 = vld [vmem:[%s1954_s4 + $0xc] sm:$0x3] }
 0x6f2   :  { %v238_v1 = vperm.slane %v214_v63, 0 }
 0x743   :  { %v777_v56 = vpop.permute.xlu2 %776 }
 0x744   :  { %v779_v57 = vadd.f32 %v777_v56, %v773_v55 }
 0x746   :  { %1402 = vtanh.f32 %v779_v57 }
 0x74c   :  { %v1403_v60 = vpop.eup %1402 }
 0x74d   :  { %v1835_v5 = vmul.f32 %v1403_v60, %v770_v3  ;;  %v274_v60 = vadd.f32 %v238_v1, %v1818_v4 }
 0x74f   :  { %v789_v6 = vpack.c.bf16 %v1835_v5, %v1835_v5 }
 0x751   :  { %794 = vrot.lane.b32.xlu0 %v789_v6, %s1535_s17 }
 0x7c3   :  { %v795_v59 = vpop.permute.xlu0 %794 }
 0x7c4   :  { %1306 = vmatmul.msk.bf16.vlgmr.msra.gmra.mxu2 %vm340_vm9, %v795_v59  ;;  %1307 = vmatmul.msk.bf16.vlgmr.msra.gmra.mxu3 %vm340_vm9, %v795_v59 }
 0x847   :  { %v808_v10 = vpop.f32.mrf.mxu2  ;;  %v821_v15 = vpop.f32.mrf.mxu3 }
 0x848   :  { %v809_v31 = vadd.f32 %v808_v10, %v272_v13  ;;  %v822_v29 = vadd.f32 %v821_v15, %v273_v26 }
 0x84a   :  { %v1308_v33 = vmul.f32 -1.442695, %v809_v31  ;;  %v1309_v18 = vmul.f32 -1.442695, %v822_v29  ;;  %v239_v31 = vperm.slane %v214_v63, 1 }
 0x84c   :  { %1404 = vpow2.f32 %v1308_v33  ;;  %v275_v33 = vadd.f32 %v239_v31, %v1820_v12 }
 0x84f   :  { %v810_v19 = vpop.f32.mrf.mxu2  ;;  %v823_v21 = vpop.f32.mrf.mxu3 }
 0x852   :  { %v1405_v23 = vpop.eup %1404 }
 0x853   :  { %v831_v24 = vadd.f32 1.0, %v1405_v23 }
 0x855   :  { %1406 = vrcp.f32 %v831_v24  ;;  %v844_v34 = vand.u32 2147483648, %v831_v24  ;;  %v842_v35 = vand.u32 2147483647, %v831_v24  ;;  %vm838_vm15 = vweird.f32 %v831_v24 }
 0x856   :  { %1408 = vtanh.f32 %v822_v29 }
 0x857   :  { %v845_v37 = vor.u32 1.1754944e-38, %v844_v34  ;;  %vm843_vm2 = vcmp.eq.f32.partialorder %v842_v35, 8.507059e+37  ;;  %1410 = vpow2.f32 %v1309_v18 }
 0x85b   :  { %v1407_v28 = vpop.eup %1406 }
 0x85c   :  { %v834_v30 = vmul.f32 %v1407_v28, %v831_v24  ;;  %vm839_vm14 = vweird.f32 %v1407_v28  ;;  %v1409_v39 = vpop.eup %1408 }
 0x85d   :  { %vm840_vm1 = vmor %vm838_vm15, %vm839_vm14  ;;  %v1411_v42 = vpop.eup %1410 }
 0x85e   :  { %v835_v32 = vsub.f32 1.0, %v834_v30  ;;  %v832_v43 = vadd.f32 1.0, %v1411_v42 }
 0x860   :  { %v836_v16 = vmul.f32 %v1407_v28, %v835_v32  ;;  %1412 = vrcp.f32 %v832_v43  ;;  %v859_v52 = vand.u32 2147483648, %v832_v43  ;;  %vm853_vm4 = vweird.f32 %v832_v43 }
 0x861   :  { %v857_v53 = vand.u32 2147483647, %v832_v43 }
 0x862   :  { %v837_v36 = vadd.f32 %v1407_v28, %v836_v16  ;;  %v860_v55 = vor.u32 1.1754944e-38, %v859_v52 }
 0x863   :  { %vm858_vm6 = vcmp.eq.f32.partialorder %v857_v53, 8.507059e+37  ;;  %v215_v53 = vld [vmem:[%s1954_s4 + $0xe] sm:$0x3] }
 0x864   :  { %v841_v38 = vsel %vm840_vm1, %v1407_v28, %v837_v36 }
 0x865   :  { %v846_v40 = vsel %vm843_vm2, %v845_v37, %v841_v38 }
 0x866   :  { %v865_v41 = vmul.f32 %v1409_v39, %v846_v40  ;;  %v1413_v44 = vpop.eup %1412  ;;  %v864_v48 = vmul.f32 %v846_v40, %v779_v57 }
 0x867   :  { %v849_v45 = vmul.f32 %v1413_v44, %v832_v43  ;;  %vm854_vm3 = vweird.f32 %v1413_v44 }
 0x868   :  { %867 = vrot.lane.b32.xlu1 %v865_v41, %s1535_s17  ;;  %vm855_vm5 = vmor %vm853_vm4, %vm854_vm3 }
 0x869   :  { %v850_v46 = vsub.f32 1.0, %v849_v45 }
 0x86b   :  { %v851_v47 = vmul.f32 %v1413_v44, %v850_v46 }
 0x86d   :  { %v852_v51 = vadd.f32 %v1413_v44, %v851_v47 }
 0x86f   :  { %v856_v54 = vsel %vm855_vm5, %v1413_v44, %v852_v51 }
 0x870   :  { %v861_v58 = vsel %vm858_vm6, %v860_v55, %v856_v54  ;;  %v240_v54 = vperm.slane %v215_v53, 0 }
 0x872   :  { %v276_v55 = vadd.f32 %v240_v54, %v1822_v9 }
 0x8da   :  { %v868_v49 = vpop.permute.xlu1 %867 }
 0x8db   :  { %v870_v50 = vadd.f32 %v868_v49, %v864_v48 }
 0x8dd   :  { %1414 = vtanh.f32 %v870_v50 }
 0x8e3   :  { %v1415_v56 = vpop.eup %1414 }
 0x8e4   :  { %v1848_v61 = vmul.f32 %v1415_v56, %v861_v58 }
 0x8e6   :  { %v880_v62 = vpack.c.bf16 %v1848_v61, %v1848_v61 }
 0x8e8   :  { %885 = vrot.lane.b32.xlu2 %v880_v62, %s1535_s17 }
 0x942   :  { %v886_v57 = vpop.permute.xlu2 %885 }
 0x943   :  { %1310 = vmatmul.msk.bf16.vlgmr.msra.gmra.mxu0 %vm340_vm9, %v886_v57  ;;  %1311 = vmatmul.msk.bf16.vlgmr.msra.gmra.mxu1 %vm340_vm9, %v886_v57 }
 0x9c0   :  { %v899_v3 = vpop.f32.mrf.mxu0  ;;  %v912_v6 = vpop.f32.mrf.mxu1 }
 0x9c1   :  { %v900_v59 = vadd.f32 %v899_v3, %v274_v60  ;;  %v913_v21 = vadd.f32 %v912_v6, %v275_v33  ;;  %v241_v6 = vperm.slane %v215_v53, 1 }
 0x9c3   :  { %v1312_v8 = vmul.f32 -1.442695, %v900_v59  ;;  %v1313_v12 = vmul.f32 -1.442695, %v913_v21  ;;  %v277_v59 = vadd.f32 %v241_v6, %v1824_v17  ;;  %v1879_v17 = vld [vmem:[%s1951_s1] sm:$0xff] }
 0x9c4   :  { %vm418_vm5 = vcmp.gt.s32.totalorder %v1879_v17, 4294967295  ;;  %vm600_vm6 = vcmp.gt.s32.totalorder %v1879_v17, 1 }
 0x9c5   :  { %1416 = vpow2.f32 %v1312_v8 }
 0x9c8   :  { %v901_v11 = vpop.f32.mrf.mxu0  ;;  %v914_v13 = vpop.f32.mrf.mxu1 }
 0x9cb   :  { %v1417_v10 = vpop.eup %1416 }
 0x9cc   :  { %v922_v15 = vadd.f32 1.0, %v1417_v10 }
 0x9ce   :  { %1418 = vrcp.f32 %v922_v15  ;;  %v935_v25 = vand.u32 2147483648, %v922_v15  ;;  %v933_v26 = vand.u32 2147483647, %v922_v15  ;;  %vm929_vm8 = vweird.f32 %v922_v15 }
 0x9cf   :  { %1420 = vtanh.f32 %v913_v21 }
 0x9d0   :  { %v936_v29 = vor.u32 1.1754944e-38, %v935_v25  ;;  %vm934_vm11 = vcmp.eq.f32.partialorder %v933_v26, 8.507059e+37  ;;  %1422 = vpow2.f32 %v1313_v12 }
 0x9d4   :  { %v1419_v19 = vpop.eup %1418 }
 0x9d5   :  { %v925_v23 = vmul.f32 %v1419_v19, %v922_v15  ;;  %vm930_vm7 = vweird.f32 %v1419_v19  ;;  %v1421_v32 = vpop.eup %1420 }
 0x9d6   :  { %vm931_vm10 = vmor %vm929_vm8, %vm930_vm7  ;;  %v1423_v35 = vpop.eup %1422  ;;  %vm691_vm7 = vcmp.gt.s32.totalorder %v1879_v17, 2 }
 0x9d7   :  { %v926_v24 = vsub.f32 1.0, %v925_v23  ;;  %v923_v36 = vadd.f32 1.0, %v1423_v35 }
 0x9d9   :  { %v927_v4 = vmul.f32 %v1419_v19, %v926_v24  ;;  %1424 = vrcp.f32 %v923_v36  ;;  %v950_v44 = vand.u32 2147483648, %v923_v36  ;;  %vm944_vm13 = vweird.f32 %v923_v36 }
 0x9da   :  { %v948_v45 = vand.u32 2147483647, %v923_v36 }
 0x9db   :  { %v928_v28 = vadd.f32 %v1419_v19, %v927_v4  ;;  %v951_v47 = vor.u32 1.1754944e-38, %v950_v44  ;;  %v419_v4 = vsel %vm418_vm5, 1, %v1534_v0  ;;  %vm782_vm5 = vcmp.gt.s32.totalorder %v1879_v17, 3 }
 0x9dc   :  { %vm949_vm15 = vcmp.eq.f32.partialorder %v948_v45, 8.507059e+37 }
 0x9dd   :  { %v932_v30 = vsel %vm931_vm10, %v1419_v19, %v928_v28 }
 0x9de   :  { %v937_v34 = vsel %vm934_vm11, %v936_v29, %v932_v30 }
 0x9df   :  { %v956_v16 = vmul.f32 %v1421_v32, %v937_v34  ;;  %v1425_v37 = vpop.eup %1424  ;;  %v955_v41 = vmul.f32 %v937_v34, %v870_v50  ;;  %v601_v34 = vsel %vm600_vm6, 1, %v1534_v0  ;;  %vm1055_vm6 = vcmp.gt.s32.totalorder %v1879_v17, 6 }
 0x9e0   :  { %v940_v38 = vmul.f32 %v1425_v37, %v923_v36  ;;  %vm945_vm12 = vweird.f32 %v1425_v37 }
 0x9e1   :  { %958 = vrot.lane.b32.xlu0 %v956_v16, %s1535_s17  ;;  %vm946_vm14 = vmor %vm944_vm13, %vm945_vm12  ;;  %v692_v16 = vsel %vm691_vm7, 1, %v1534_v0  ;;  %vm509_vm13 = vcmp.gt.s32.totalorder %v1879_v17, 0 }
 0x9e2   :  { %v941_v39 = vsub.f32 1.0, %v940_v38 }
 0x9e4   :  { %v942_v40 = vmul.f32 %v1425_v37, %v941_v39 }
 0x9e6   :  { %v943_v43 = vadd.f32 %v1425_v37, %v942_v40 }
 0x9e8   :  { %v947_v46 = vsel %vm946_vm14, %v1425_v37, %v943_v43  ;;  %vm964_vm14 = vcmp.gt.s32.totalorder %v1879_v17, 5 }
 0x9e9   :  { %v952_v49 = vsel %vm949_vm15, %v951_v47, %v947_v46  ;;  %v510_v47 = vsel %vm509_vm13, 1, %v1534_v0  ;;  %vm1146_vm15 = vcmp.gt.s32.totalorder %v1879_v17, 7 }
 0x9ea   :  { %v1147_v6 = vsel %vm1146_vm15, 1, %v1534_v0 }
 0xa53   :  { %v959_v18 = vpop.permute.xlu0 %958 }
 0xa54   :  { %v1861_v42 = vadd.f32 %v959_v18, %v955_v41 }
 0xa56   :  { %1426 = vtanh.f32 %v1861_v42 }
 0xa5c   :  { %v1427_v48 = vpop.eup %1426 }
 0xa5d   :  { %v1864_v51 = vmul.f32 %v1427_v48, %v952_v49  ;;  %v216_v49 = vld [vmem:[%s1954_s4 + $0x10] sm:$0x3] }
 0xa5f   :  { %v971_v50 = vpack.c.bf16 %v1864_v51, %v1864_v51 }
 0xa61   :  { %976 = vrot.lane.b32.xlu1 %v971_v50, %s1535_s17  ;;  %v242_v50 = vperm.slane %v216_v49, 0 }
 0xa69   :  { %603 = vperm.xlu1 %1341, %v601_v34   ;;  %v1157_v34 = vld [vmem:[%s1955_s5 + $0x18] sm:$0xff] }
 0xa6a   :  { %1179 = vmatpush.msra.mxu2 %v1157_v34 }
 0xad3   :  { %v977_v52 = vpop.permute.xlu1 %976 }
 0xad4   :  { %1314 = vmatmul.msk.bf16.vlgmr.msrb.gmra.mxu2 %vm340_vm9, %v977_v52  ;;  %1315 = vmatmul.msk.bf16.vlgmr.msrb.gmra.mxu3 %vm340_vm9, %v977_v52  ;;  %v278_v52 = vadd.f32 %v242_v50, %v1826_v22  ;;  %v243_v22 = vperm.slane %v216_v49, 1 }
 0xb57   :  { %v990_v56 = vpop.f32.mrf.mxu2  ;;  %v1003_v58 = vpop.f32.mrf.mxu3 }
 0xb58   :  { %v991_v62 = vadd.f32 %v990_v56, %v276_v55  ;;  %v1004_v11 = vadd.f32 %v1003_v58, %v277_v59  ;;  %v965_v56 = vsel %vm964_vm14, 1, %v1534_v0 }
 0xb5a   :  { %v1316_v57 = vmul.f32 -1.442695, %v991_v62  ;;  %v1317_v26 = vmul.f32 -1.442695, %v1004_v11 }
 0xb5c   :  { %1428 = vpow2.f32 %v1316_v57 }
 0xb5f   :  { %v992_v63 = vpop.f32.mrf.mxu2  ;;  %v1005_v1 = vpop.f32.mrf.mxu3 }
 0xb62   :  { %v1429_v60 = vpop.eup %1428 }
 0xb63   :  { %v1013_v3 = vadd.f32 1.0, %v1429_v60 }
 0xb65   :  { %1430 = vrcp.f32 %v1013_v3  ;;  %v1026_v15 = vand.u32 2147483648, %v1013_v3  ;;  %v1024_v31 = vand.u32 2147483647, %v1013_v3  ;;  %vm1020_vm2 = vweird.f32 %v1013_v3 }
 0xb66   :  { %1432 = vtanh.f32 %v1004_v11 }
 0xb67   :  { %v1027_v19 = vor.u32 1.1754944e-38, %v1026_v15  ;;  %vm1025_vm4 = vcmp.eq.f32.partialorder %v1024_v31, 8.507059e+37  ;;  %1434 = vpow2.f32 %v1317_v26 }
 0xb6b   :  { %v1431_v8 = vpop.eup %1430 }
 0xb6c   :  { %v1016_v13 = vmul.f32 %v1431_v8, %v1013_v3  ;;  %vm1021_vm1 = vweird.f32 %v1431_v8  ;;  %v1433_v23 = vpop.eup %1432  ;;  %v279_v3 = vadd.f32 %v243_v22, %v1828_v27  ;;  %v1190_v22 = vld [vmem:[#allocation6 + $0x10] sm:$0xff] }
 0xb6d   :  { %vm1022_vm3 = vmor %vm1020_vm2, %vm1021_vm1  ;;  %v1435_v28 = vpop.eup %1434 }
 0xb6e   :  { %v1017_v10 = vsub.f32 1.0, %v1016_v13  ;;  %v1014_v29 = vadd.f32 1.0, %v1435_v28 }
 0xb70   :  { %v1018_v9 = vmul.f32 %v1431_v8, %v1017_v10  ;;  %1436 = vrcp.f32 %v1014_v29  ;;  %v1041_v40 = vand.u32 2147483648, %v1014_v29  ;;  %vm1035_vm10 = vweird.f32 %v1014_v29 }
 0xb71   :  { %v1039_v41 = vand.u32 2147483647, %v1014_v29 }
 0xb72   :  { %v1019_v33 = vadd.f32 %v1431_v8, %v1018_v9  ;;  %v1042_v43 = vor.u32 1.1754944e-38, %v1041_v40 }
 0xb73   :  { %vm1040_vm12 = vcmp.eq.f32.partialorder %v1039_v41, 8.507059e+37 }
 0xb74   :  { %v1023_v21 = vsel %vm1022_vm3, %v1431_v8, %v1019_v33 }
 0xb75   :  { %v1028_v24 = vsel %vm1025_vm4, %v1027_v19, %v1023_v21 }
 0xb76   :  { %v1047_v25 = vmul.f32 %v1433_v23, %v1028_v24  ;;  %v1437_v30 = vpop.eup %1436  ;;  %v1046_v36 = vmul.f32 %v1028_v24, %v1861_v42  ;;  %v783_v24 = vsel %vm782_vm5, 1, %v1534_v0 }
 0xb77   :  { %v1031_v32 = vmul.f32 %v1437_v30, %v1014_v29  ;;  %vm1036_vm8 = vweird.f32 %v1437_v30 }
 0xb78   :  { %1049 = vrot.lane.b32.xlu2 %v1047_v25, %s1535_s17  ;;  %vm1037_vm11 = vmor %vm1035_vm10, %vm1036_vm8  ;;  %v1056_v25 = vsel %vm1055_vm6, 1, %v1534_v0 }
 0xb79   :  { %v1032_v12 = vsub.f32 1.0, %v1031_v32 }
 0xb7b   :  { %v1033_v35 = vmul.f32 %v1437_v30, %v1032_v12 }
 0xb7d   :  { %v1034_v39 = vadd.f32 %v1437_v30, %v1033_v35  ;;  %v1154_v35 = vld [vmem:[%s1955_s5] sm:$0xff] }
 0xb7f   :  { %v1038_v18 = vsel %vm1037_vm11, %v1437_v30, %v1034_v39 }
 0xb80   :  { %421 = vperm.xlu2 %1339, %v419_v4   ;;  %v1043_v45 = vsel %vm1040_vm12, %v1042_v43, %v1038_v18 }
 0xb88   :  { %694 = vperm.xlu2 %1339, %v692_v16   ;;  %v1156_v16 = vld [vmem:[%s1955_s5 + $0x10] sm:$0xff] }
 0xb89   :  { %1180 = vmatpush.msra.mxu2 %v1156_v16 }
 0xbd2   :  { %v1050_v37 = vpop.permute.xlu2 %1049 }
 0xbd3   :  { %v1889_v38 = vadd.f32 %v1050_v37, %v1046_v36 }
 0xbd5   :  { %1438 = vtanh.f32 %v1889_v38 }
 0xbda   :  { %v422_v30 = vpop.permute.xlu2 %421 }
 0xbdb   :  { %v1439_v44 = vpop.eup %1438  ;;  %vm423_vm7 = vcmp.eq.s32.totalorder %v422_v30, 1 }
 0xbdc   :  { %v1892_v46 = vmul.f32 %v1439_v44, %v1043_v45  ;;  %v424_v44 = vsel %vm423_vm7, %v1690_v20, 0.0 }
 0xbde   :  { %v1062_v42 = vpack.c.bf16 %v1892_v46, %v1892_v46 }
 0xbe0   :  { %1067 = vrot.lane.b32.xlu0 %v1062_v42, %s1535_s17 }
 0xbe2   :  { %v695_v36 = vpop.permute.xlu2 %694 }
 0xbe3   :  { %vm696_vm14 = vcmp.eq.s32.totalorder %v695_v36, 1 }
 0xbe8   :  { %512 = vperm.xlu0 %1340, %v510_v47  }
 0xbf0   :  { %967 = vperm.xlu0 %1340, %v965_v56  }
 0xc52   :  { %v1068_v48 = vpop.permute.xlu0 %1067 }
 0xc53   :  { %1318 = vmatmul.msk.bf16.vlgmr.msrb.gmra.mxu0 %vm340_vm9, %v1068_v48  ;;  %1319 = vmatmul.msk.bf16.vlgmr.msrb.gmra.mxu1 %vm340_vm9, %v1068_v48  ;;  %vm873_vm9 = vcmp.gt.s32.totalorder %v1879_v17, 4  ;;  %v604_v17 = vpop.permute.xlu1 %603 }
 0xc54   :  { %v874_v63 = vsel %vm873_vm9, 1, %v1534_v0  ;;  %v1155_v0 = vld [vmem:[%s1955_s5 + $0x8] sm:$0xff]  ;;  %vm605_vm11 = vcmp.eq.s32.totalorder %v604_v17, 1 }
 0xc55   :  { %876 = vperm.xlu2 %1339, %v874_v63   ;;  %1181 = vmatpush.msra.mxu2 %v1155_v0 }
 0xc57   :  { %1182 = vmatpush.msra.mxu2 %v1154_v35 }
 0xc5a   :  { %v513_v37 = vpop.permute.xlu0 %512 }
 0xc5b   :  { %vm514_vm8 = vcmp.eq.s32.totalorder %v513_v37, 1 }
 0xc5c   :  { %v515_v42 = vsel %vm514_vm8, %v1718_v14, %v424_v44 }
 0xc5d   :  { %1149 = vperm.xlu2 %1339, %v1147_v6  }
 0xc62   :  { %v968_v56 = vpop.permute.xlu0 %967 }
 0xcaf   :  { %v877_v48 = vpop.permute.xlu2 %876 }
 0xcd0   :  { %v1081_v53 = vpop.f32.mrf.mxu0  ;;  %v1094_v54 = vpop.f32.mrf.mxu1 }
 0xcd1   :  { %v1082_v55 = vadd.f32 %v1081_v53, %v278_v52  ;;  %v1095_v8 = vadd.f32 %v1094_v54, %v279_v3  ;;  %v1188_v3 = vld [vmem:[#allocation6] sm:$0xff] }
 0xcd3   :  { %v1320_v58 = vmul.f32 -1.442695, %v1082_v55  ;;  %v1321_v4 = vmul.f32 -1.442695, %v1095_v8 }
 0xcd5   :  { %1440 = vpow2.f32 %v1320_v58 }
 0xcd8   :  { %v1083_v62 = vpop.f32.mrf.mxu0  ;;  %v1096_v57 = vpop.f32.mrf.mxu1 }
 0xcd9   :  { %v1150_v62 = vpop.permute.xlu2 %1149 }
 0xcdb   :  { %v1441_v1 = vpop.eup %1440 }
 0xcdc   :  { %v1104_v60 = vadd.f32 1.0, %v1441_v1 }
 0xcde   :  { %1442 = vrcp.f32 %v1104_v60  ;;  %v1117_v10 = vand.u32 2147483648, %v1104_v60  ;;  %v1115_v9 = vand.u32 2147483647, %v1104_v60  ;;  %vm1111_vm2 = vweird.f32 %v1104_v60 }
 0xcdf   :  { %1444 = vtanh.f32 %v1095_v8  ;;  %v1343_v8 = vld [vmem:[%s1958_s8] ss:$0 sm:$0xff] }
 0xce0   :  { %v1118_v33 = vor.u32 1.1754944e-38, %v1117_v10  ;;  %vm1116_vm4 = vcmp.eq.f32.partialorder %v1115_v9, 8.507059e+37  ;;  %1446 = vpow2.f32 %v1321_v4 }
 0xce4   :  { %v1443_v59 = vpop.eup %1442 }
 0xce5   :  { %v1107_v11 = vmul.f32 %v1443_v59, %v1104_v60  ;;  %vm1112_vm1 = vweird.f32 %v1443_v59  ;;  %v1445_v21 = vpop.eup %1444 }
 0xce6   :  { %vm1113_vm3 = vmor %vm1111_vm2, %vm1112_vm1  ;;  %v1447_v26 = vpop.eup %1446  ;;  %vm878_vm1 = vcmp.eq.s32.totalorder %v877_v48, 1  ;;  %vm969_vm2 = vcmp.eq.s32.totalorder %v968_v56, 1 }
 0xce7   :  { %v1108_v13 = vsub.f32 1.0, %v1107_v11  ;;  %v1105_v28 = vadd.f32 1.0, %v1447_v26 }
 0xce9   :  { %v1109_v15 = vmul.f32 %v1443_v59, %v1108_v13  ;;  %1448 = vrcp.f32 %v1105_v28  ;;  %v1132_v45 = vand.u32 2147483648, %v1105_v28  ;;  %vm1126_vm12 = vweird.f32 %v1105_v28 }
 0xcea   :  { %v1130_v47 = vand.u32 2147483647, %v1105_v28 }
 0xceb   :  { %v1110_v31 = vadd.f32 %v1443_v59, %v1109_v15  ;;  %v1133_v50 = vor.u32 1.1754944e-38, %v1132_v45 }
 0xcec   :  { %vm1131_vm9 = vcmp.eq.f32.partialorder %v1130_v47, 8.507059e+37 }
 0xced   :  { %v1114_v19 = vsel %vm1113_vm3, %v1443_v59, %v1110_v31 }
 0xcee   :  { %v1119_v27 = vsel %vm1116_vm4, %v1118_v33, %v1114_v19  ;;  %vm1151_vm4 = vcmp.eq.s32.totalorder %v1150_v62, 1 }
 0xcef   :  { %v1138_v23 = vmul.f32 %v1445_v21, %v1119_v27  ;;  %v1449_v29 = vpop.eup %1448  ;;  %v1137_v40 = vmul.f32 %v1119_v27, %v1889_v38  ;;  %v606_v38 = vsel %vm605_vm11, %v1746_v7, %v515_v42 }
 0xcf0   :  { %v1122_v32 = vmul.f32 %v1449_v29, %v1105_v28  ;;  %vm1127_vm10 = vweird.f32 %v1449_v29  ;;  %v697_v20 = vsel %vm696_vm14, %v1794_v2, %v606_v38  ;;  %v1191_v2 = vld [vmem:[#allocation6 + $0x18] sm:$0xff] }
 0xcf1   :  { %1140 = vrot.lane.b32.xlu1 %v1138_v23, %s1535_s17  ;;  %vm1128_vm13 = vmor %vm1126_vm12, %vm1127_vm10  ;;  %1211 = vmatpush.msra.mxu3 %v1191_v2 }
 0xcf2   :  { %v1123_v12 = vsub.f32 1.0, %v1122_v32 }
 0xcf3   :  { %1212 = vmatpush.msra.mxu3 %v1190_v22 }
 0xcf4   :  { %v1124_v39 = vmul.f32 %v1449_v29, %v1123_v12 }
 0xcf6   :  { %v1125_v43 = vadd.f32 %v1449_v29, %v1124_v39 }
 0xcf8   :  { %v1129_v49 = vsel %vm1128_vm13, %v1449_v29, %v1125_v43 }
 0xcf9   :  { %785 = vperm.xlu1 %1341, %v783_v24   ;;  %v1134_v54 = vsel %vm1131_vm9, %v1133_v50, %v1129_v49 }
 0xd01   :  { %1058 = vperm.xlu1 %1341, %v1056_v25  }
 0xd63   :  { %v1141_v41 = vpop.permute.xlu1 %1140 }
 0xd64   :  { %v1143_v18 = vadd.f32 %v1141_v41, %v1137_v40 }
 0xd66   :  { %1450 = vtanh.f32 %v1143_v18 }
 0xd6b   :  { %v786_v52 = vpop.permute.xlu1 %785 }
 0xd6c   :  { %v1451_v53 = vpop.eup %1450  ;;  %vm787_vm15 = vcmp.eq.s32.totalorder %v786_v52, 1 }
 0xd6d   :  { %v1145_v55 = vmul.f32 %v1451_v53, %v1134_v54  ;;  %v788_v14 = vsel %vm787_vm15, %v1835_v5, %v697_v20  ;;  %v1189_v5 = vld [vmem:[#allocation6 + $0x8] sm:$0xff] }
 0xd6e   :  { %v879_v58 = vsel %vm878_vm1, %v1848_v61, %v788_v14  ;;  %1213 = vmatpush.msra.mxu3 %v1189_v5 }
 0xd6f   :  { %v970_v7 = vsel %vm969_vm2, %v1864_v51, %v879_v58  ;;  %v1342_v51 = vld [vmem:[%s1956_s6] ss:$0 sm:$0xff] }
 0xd70   :  { %1214 = vmatpush.msra.mxu3 %v1188_v3 }
 0xd73   :  { %v1059_v57 = vpop.permute.xlu1 %1058 }
 0xd74   :  { %vm1060_vm3 = vcmp.eq.s32.totalorder %v1059_v57, 1 }
 0xd75   :  { %v1061_v63 = vsel %vm1060_vm3, %v1892_v46, %v970_v7 }
 0xd76   :  { %v1152_v1 = vsel %vm1151_vm4, %v1145_v55, %v1061_v63 }
 0xd77   :  { %v1153_v60 = vmax.f32 %v1152_v1, 0.0 }
 0xd79   :  { %1163 = vrot.lane.b32.xlu0 %v1153_v60, %s1535_s17 }
 0xdeb   :  { %v1164_v61 = vpop.permute.xlu0 %1163 }
 0xdec   :  { %1322 = vmatmul.msk.f32.vlgmr.msra.gmra.mxu2 %vm92_vm0, %v1164_v61 }
 0xe6f   :  { %v1184_v46 = vpop.f32.mrf.mxu2 }
 0xe70   :  { %v1185_v6 = vadd.f32 %v1342_v51, %v1184_v46 }
 0xe72   :  { %v1187_v59 = vmax.f32 %v1185_v6, 0.0 }
 0xe74   :  { %1323 = vmatmul.msk.f32.vlgmr.msra.gmra.mxu3 %vm92_vm0, %v1187_v59 }
 0xef7   :  { %v1216_v11 = vpop.f32.mrf.mxu3 }
 0xef8   :  { %v1217_v13 = vadd.f32 %v1343_v8, %v1216_v11 }
 0xefa   :  { %1219 = vst [vmem:[#allocation8] sm:$0xff] %v1217_v13 }
 0xefb   :  { %1230 = dma.vmem_to_hbm [thread:$0]  %s1226_s14, 128, %s1228_s0, [#allocation5]  }
 0xefc   :  { %1528 = dma.done.wait [#allocation5], 128  }
 0xefd   :  { %1529 = vsyncadd [#allocation5], 4294967168 }
 0xefe   :  { %1235 = vsyncpa [#allocation4], 1 }
 0xeff   :  { %1236 = vsyncpa [#allocation7], 1 }
 0xf00   :  { %1237 = vsyncpa [#allocation5], 1 }

</bundles_post_ra>
